<compile_context>
chip_gen: v6e
topology: v6e:2x2x1
jax: 0.10.0
libtpu: 0.0.40
codegen_flags: <defaults>
</compile_context>

<pallas_src>
import functools

import jax
import jax.numpy as jnp
from jax import lax
from jax.experimental import pallas as pl
from jax.experimental.pallas import tpu as pltpu


# ----------------------------------------------------------------------------
# In-kernel helpers
# ----------------------------------------------------------------------------
def _layer_norm(h, g, b, eps=1e-5):
    mu = jnp.mean(h, axis=-1, keepdims=True)
    xc = h - mu
    var = jnp.mean(xc * xc, axis=-1, keepdims=True)
    return xc * lax.rsqrt(var + eps) * g + b


# ----------------------------------------------------------------------------
# Fused forward kernel.
# grid = (B // Bt, depth); axis 0 "parallel" (megacore), axis 1 "arbitrary".
# The residual stream for the current batch block lives in VMEM scratch across
# the depth axis; per-layer weights are streamed via BlockSpec index (d, ...).
# ----------------------------------------------------------------------------
def _gtransformer_kernel(
    x_ref,                 # (Bt, S, 2E)  bf16
    uw_ref, ub_ref,        # (2E, E) bf16, (1, E) f32
    wqkv_ref, bqkv_ref,    # (1, E, 3E) bf16, (1, 1, 3E) f32   (q pre-scaled)
    wo_ref,                # (1, E, E)  bf16
    w1_ref, b1_ref,        # (1, E, 4E) bf16, (1, 1, 4E) f32
    w2_ref,                # (1, 4E, E) bf16
    lvec_ref,              # (1, 6, E)  f32  rows: bo, ln1_g, ln1_b, b2, ln2_g, ln2_b
    tw_ref, tb_ref,        # (E, Vp) bf16, (1, Vp) f32 (pad bias = -1e30)
    o_ref,                 # (Bt, S, Vp) f32
    h_ref,                 # scratch (Bt*S, E) f32 (residual stream)
    *, heads,
):
    bf16 = jnp.bfloat16
    f32 = jnp.float32
    bt, S = x_ref.shape[0], x_ref.shape[1]
    E = uw_ref.shape[1]
    hd = E // heads
    M = bt * S

    d = pl.program_id(1)
    last = pl.num_programs(1) - 1

    # ---- unify embeddings once per batch block (layer 0 only) --------------
    @pl.when(d == 0)
    def _():
        cat = x_ref[...].reshape(M, 2 * E)                       # bf16
        h_ref[...] = (jnp.dot(cat, uw_ref[...],
                              preferred_element_type=f32) + ub_ref[...])

    h = h_ref[...]                                               # (M, E) f32

    # additive causal bias, (1, S, S), broadcast over heads (kept in f32)
    row = lax.broadcasted_iota(jnp.int32, (S, S), 0)
    col = lax.broadcasted_iota(jnp.int32, (S, S), 1)
    causal_bias = jnp.where(col <= row, 0.0, -1e30).astype(f32)[None]

    lvec = lvec_ref[0]                                           # (6, E) f32
    bo_v = lvec[0:1]
    g1_v = lvec[1:2]
    b1_v = lvec[2:3]
    b2_v = lvec[3:4]
    g2_v = lvec[4:5]
    b2n_v = lvec[5:6]

    # ---- fused QKV: ONE (M,E)@(E,3E) lane-dense matmul ---------------------
    hb = h.astype(bf16)
    qkv = (jnp.dot(hb, wqkv_ref[0], preferred_element_type=f32)
           + bqkv_ref[0])                                        # (M, 3E)

    # ---- per-batch-element causal attention (head-major 3D einsums) --------
    # TODO(synk): pltpu.einshape could express the head-major relayout directly;
    # reshape + swapaxes is used here (lowers via the same XLU/copy path).
    outs = []
    for bi in range(bt):                                         # Bt is small & static
        qkv_b = qkv[bi * S:(bi + 1) * S]                         # (S, 3E)
        qkv_h = jnp.swapaxes(qkv_b.reshape(S, 3 * heads, hd), 0, 1)  # (3H, S, hd)
        q = qkv_h[:heads].astype(bf16)                           # already scaled
        k = qkv_h[heads:2 * heads].astype(bf16)
        v = qkv_h[2 * heads:].astype(bf16)

        scores = jnp.einsum('hsd,htd->hst', q, k,
                            preferred_element_type=f32) + causal_bias
        mx = jnp.max(scores, axis=-1, keepdims=True)
        p = jnp.exp(scores - mx)
        p = p * pl.reciprocal(jnp.sum(p, axis=-1, keepdims=True), approx=True)

        oh = jnp.einsum('hst,htd->hsd', p.astype(bf16), v,
                        preferred_element_type=f32)              # (H, S, hd)
        outs.append(jnp.swapaxes(oh, 0, 1).reshape(S, E))        # (S, E)

    out_flat = jnp.concatenate(outs, axis=0) if bt > 1 else outs[0]   # (M, E)

    # ---- output projection: ONE (M,E)@(E,E) matmul --------------------------
    attn = (jnp.dot(out_flat.astype(bf16), wo_ref[0],
                    preferred_element_type=f32) + bo_v)

    # residual + LayerNorm 1
    h1 = _layer_norm(attn + h, g1_v, b1_v)

    # feed-forward (4x hidden, ReLU)
    ff = (jnp.dot(h1.astype(bf16), w1_ref[0],
                  preferred_element_type=f32) + b1_ref[0])
    ff = jnp.maximum(ff, 0.0)
    ff = (jnp.dot(ff.astype(bf16), w2_ref[0],
                  preferred_element_type=f32) + b2_v)

    # residual + LayerNorm 2 -> carry residual to the next layer (grid step)
    h_new = _layer_norm(ff + h1, g2_v, b2n_v)
    h_ref[...] = h_new

    # ---- final projection + log-softmax (last layer only) -------------------
    @pl.when(d == last)
    def _():
        logits = (jnp.dot(h_new.astype(bf16), tw_ref[...],
                          preferred_element_type=f32) + tb_ref[...])   # (M, Vp)
        mx = jnp.max(logits, axis=-1, keepdims=True)
        lse = mx + jnp.log(jnp.sum(jnp.exp(logits - mx), axis=-1, keepdims=True))
        o_ref[...] = (logits - lse).reshape(o_ref.shape)


# ----------------------------------------------------------------------------
# Parameter init (deterministic, synthetic; torch-Linear-equivalent layout:
# every weight is [in_features, out_features], y = x @ W + b)
# ----------------------------------------------------------------------------
def init_params(key, config):
    E = config["emb"]
    V = config["num_tokens"]
    S = config["seq_length"]
    depth = config["depth"]
    ff = 4 * E

    def nrm(k, shape, scale=0.1):
        return scale * jax.random.normal(k, shape, dtype=jnp.float32)

    keys = jax.random.split(key, 6 + depth)
    params = {
        "tok_emb": nrm(keys[0], (V, E), 1.0),
        "pos_emb": nrm(keys[1], (S, E), 1.0),
        "unify_w": nrm(keys[2], (2 * E, E)),
        "unify_b": jnp.zeros((E,), jnp.float32),
        "to_w": nrm(keys[3], (E, V)),
        "to_b": jnp.zeros((V,), jnp.float32),
        "blocks": [],
    }
    for d in range(depth):
        bk = jax.random.split(keys[6 + d], 6)
        params["blocks"].append({
            "wq": nrm(bk[0], (E, E)), "bq": jnp.zeros((E,), jnp.float32),
            "wk": nrm(bk[1], (E, E)), "bk": jnp.zeros((E,), jnp.float32),
            "wv": nrm(bk[2], (E, E)), "bv": jnp.zeros((E,), jnp.float32),
            "wo": nrm(bk[3], (E, E)), "bo": jnp.zeros((E,), jnp.float32),
            "ln1_g": jnp.ones((E,), jnp.float32), "ln1_b": jnp.zeros((E,), jnp.float32),
            "w1": nrm(bk[4], (E, ff)), "b1": jnp.zeros((ff,), jnp.float32),
            "w2": nrm(bk[5], (ff, E)), "b2": jnp.zeros((E,), jnp.float32),
            "ln2_g": jnp.ones((E,), jnp.float32), "ln2_b": jnp.zeros((E,), jnp.float32),
        })
    return params


# ----------------------------------------------------------------------------
# One-time weight packing: fused QKV slab (scale folded into q), per-layer
# stacking for depth streaming, bf16 cast, small-f32-vector slab, vocab padding.
# ----------------------------------------------------------------------------
def _padded_vocab(V):
    return max(128, ((V + 127) // 128) * 128)


def pack_params(params, config):
    E = config["emb"]
    H = config["heads"]
    V = config["num_tokens"]
    depth = config["depth"]
    hd = E // H
    Vp = _padded_vocab(V)
    scale = 1.0 / (hd ** 0.5)
    bf, f32 = jnp.bfloat16, jnp.float32

    wqkv, bqkv, wo, w1, b1, w2, lvecs = [], [], [], [], [], [], []
    for blk in params["blocks"]:
        # fold the 1/sqrt(hd) attention scale into the q projection
        wqkv.append(jnp.concatenate(
            [blk["wq"] * scale, blk["wk"], blk["wv"]], axis=1))          # (E, 3E)
        bqkv.append(jnp.concatenate(
            [blk["bq"] * scale, blk["bk"], blk["bv"]]))                  # (3E,)
        wo.append(blk["wo"])
        w1.append(blk["w1"])
        b1.append(blk["b1"])
        w2.append(blk["w2"])
        lvecs.append(jnp.stack([blk["bo"], blk["ln1_g"], blk["ln1_b"],
                                blk["b2"], blk["ln2_g"], blk["ln2_b"]]))  # (6, E)

    to_w_pad = jnp.pad(params["to_w"], ((0, 0), (0, Vp - V))).astype(bf)
    to_b_pad = jnp.concatenate(
        [params["to_b"].astype(f32), jnp.full((Vp - V,), -1e30, f32)]
    ).reshape(1, Vp)

    return {
        "tok_emb": params["tok_emb"],
        "pos_emb": params["pos_emb"],
        "uw": params["unify_w"].astype(bf),
        "ub": params["unify_b"].reshape(1, E).astype(f32),
        "wqkv": jnp.stack(wqkv).astype(bf),                        # (D, E, 3E)
        "bqkv": jnp.stack(bqkv).reshape(depth, 1, 3 * E).astype(f32),
        "wo": jnp.stack(wo).astype(bf),                            # (D, E, E)
        "w1": jnp.stack(w1).astype(bf),                            # (D, E, 4E)
        "b1": jnp.stack(b1).reshape(depth, 1, 4 * E).astype(f32),
        "w2": jnp.stack(w2).astype(bf),                            # (D, 4E, E)
        "lvecs": jnp.stack(lvecs).astype(f32),                     # (D, 6, E)
        "tw": to_w_pad,                                            # (E, Vp)
        "tb": to_b_pad,                                            # (1, Vp)
    }


def _pick_batch_block(B, S):
    """Largest divisor of B with roughly Bt*S >= 128 rows per grid step."""
    target = max(1, -(-128 // S))           # ceil(128 / S)
    bt = 1
    for cand in range(1, B + 1):
        if B % cand == 0 and cand <= target:
            bt = cand
    return bt


def _vmem_budget_bytes():
    cap = 64 * 1024 * 1024                  # conservative fallback (v7x per-TC)
    try:
        cap = pltpu.get_tpu_info().vmem_capacity_bytes
    except Exception:
        pass
    return max(32 * 1024 * 1024, min(100 * 1024 * 1024, int(cap) * 3 // 4))


# ----------------------------------------------------------------------------
# Full forward pass (single pallas_call; grid = (batch blocks, depth))
# ----------------------------------------------------------------------------
def gtransformer_forward(x_tokens, packed, config, batch_block=None):
    B, S = x_tokens.shape
    E = config["emb"]
    H = config["heads"]
    V = config["num_tokens"]
    depth = config["depth"]
    Vp = _padded_vocab(V)
    assert E % H == 0

    bt = batch_block if batch_block is not None else _pick_batch_block(B, S)
    assert B % bt == 0
    nb = B // bt

    # TODO(synk): token/position embedding gathers stay in XLA glue
    # (data-dependent gather; a scalar-prefetch DMA kernel is overkill here).
    tok = jnp.take(packed["tok_emb"], x_tokens, axis=0)               # (B,S,E)
    pos = jnp.broadcast_to(packed["pos_emb"][:S][None], (B, S, E))    # (B,S,E)
    cat = jnp.concatenate([tok, pos], axis=-1).astype(jnp.bfloat16)   # (B,S,2E)

    def full_spec(arr):          # resident weights, DMA'd once
        nd = arr.ndim
        return pl.BlockSpec(arr.shape, lambda b, d, _n=nd: (0,) * _n)

    def layer_spec(arr):         # streamed per depth step
        nd = arr.ndim
        return pl.BlockSpec((1,) + arr.shape[1:],
                            lambda b, d, _n=nd: (d,) + (0,) * (_n - 1))

    kern = functools.partial(_gtransformer_kernel, heads=H)

    out = pl.pallas_call(
        kern,
        out_shape=jax.ShapeDtypeStruct((B, S, Vp), jnp.float32),
        grid=(nb, depth),
        in_specs=[
            pl.BlockSpec((bt, S, 2 * E), lambda b, d: (b, 0, 0)),     # activations
            full_spec(packed["uw"]), full_spec(packed["ub"]),
            layer_spec(packed["wqkv"]), layer_spec(packed["bqkv"]),
            layer_spec(packed["wo"]),
            layer_spec(packed["w1"]), layer_spec(packed["b1"]),
            layer_spec(packed["w2"]),
            layer_spec(packed["lvecs"]),
            full_spec(packed["tw"]), full_spec(packed["tb"]),
        ],
        out_specs=pl.BlockSpec((bt, S, Vp), lambda b, d: (b, 0, 0)),
        scratch_shapes=[pltpu.VMEM((bt * S, E), jnp.float32)],        # residual carry
        compiler_params=pltpu.CompilerParams(
            dimension_semantics=("parallel", "arbitrary"),
            vmem_limit_bytes=_vmem_budget_bytes(),
        ),
    )(
        cat,
        packed["uw"], packed["ub"],
        packed["wqkv"], packed["bqkv"],
        packed["wo"],
        packed["w1"], packed["b1"],
        packed["w2"],
        packed["lvecs"],
        packed["tw"], packed["tb"],
    )

    return out[:, :, :V]          # drop vocab padding -> (B, S, V) log-probs


# ----------------------------------------------------------------------------
# Pure-JAX f32 reference (same math) for a correctness sanity check
# ----------------------------------------------------------------------------
def reference_forward(x_tokens, params, config):
    B, S = x_tokens.shape
    E = config["emb"]
    H = config["heads"]
    hd = E // H
    tok = params["tok_emb"][x_tokens]
    pos = jnp.broadcast_to(params["pos_emb"][:S][None], (B, S, E))
    h = jnp.concatenate([tok, pos], -1) @ params["unify_w"] + params["unify_b"]
    mask = jnp.tril(jnp.ones((S, S), bool))
    for blk in params["blocks"]:
        q = (h @ blk["wq"] + blk["bq"]).reshape(B, S, H, hd).transpose(0, 2, 1, 3)
        k = (h @ blk["wk"] + blk["bk"]).reshape(B, S, H, hd).transpose(0, 2, 1, 3)
        v = (h @ blk["wv"] + blk["bv"]).reshape(B, S, H, hd).transpose(0, 2, 1, 3)
        att = jnp.einsum("bhsd,bhtd->bhst", q, k) / (hd ** 0.5)
        att = jnp.where(mask, att, -1e30)
        p = jax.nn.softmax(att, axis=-1)
        o = jnp.einsum("bhst,bhtd->bhsd", p, v).transpose(0, 2, 1, 3).reshape(B, S, E)
        attn = o @ blk["wo"] + blk["bo"]
        h1 = _layer_norm(attn + h, blk["ln1_g"], blk["ln1_b"])
        ff = jnp.maximum(h1 @ blk["w1"] + blk["b1"], 0.0) @ blk["w2"] + blk["b2"]
        h = _layer_norm(ff + h1, blk["ln2_g"], blk["ln2_b"])
    logits = h @ params["to_w"] + params["to_b"]
    return jax.nn.log_softmax(logits, axis=-1)


# ----------------------------------------------------------------------------
if __name__ == "__main__":
    config = dict(emb=32, heads=4, depth=2, seq_length=8, num_tokens=16)
    B, S = 2, config["seq_length"]

    key = jax.random.PRNGKey(0)
    kparams, kx = jax.random.split(key)
    params = init_params(kparams, config)
    packed = pack_params(params, config)
    x = jax.random.randint(kx, (B, S), 0, config["num_tokens"], dtype=jnp.int32)

    fwd = jax.jit(functools.partial(gtransformer_forward, config=config))
    logprobs = jax.block_until_ready(fwd(x, packed))

    assert logprobs.shape == (B, S, config["num_tokens"])
    assert bool(jnp.all(jnp.isfinite(logprobs)))
    # rows of exp(log_softmax) must sum to 1
    sums = jnp.sum(jnp.exp(logprobs), axis=-1)
    assert bool(jnp.all(jnp.abs(sums - 1.0) < 1e-3))
    # close to the f32 pure-JAX reference (bf16 matmul operands -> loose tol)
    ref = reference_forward(x, params, config)
    assert bool(jnp.max(jnp.abs(logprobs - ref)) < 0.1)

    print("KERNEL_OK")
</pallas_src>

<mosaic_0001>
module attributes {stable_mosaic.version = 11 : i64} {
  func.func @_gtransformer_kernel(%arg0: i32, %arg1: i32, %arg2: memref<2x8x64xbf16, #tpu.memory_space<vmem>>, %arg3: memref<64x32xbf16, #tpu.memory_space<vmem>>, %arg4: memref<1x32xf32, #tpu.memory_space<vmem>>, %arg5: memref<1x32x96xbf16, #tpu.memory_space<vmem>>, %arg6: memref<1x1x96xf32, #tpu.memory_space<vmem>>, %arg7: memref<1x32x32xbf16, #tpu.memory_space<vmem>>, %arg8: memref<1x32x128xbf16, #tpu.memory_space<vmem>>, %arg9: memref<1x1x128xf32, #tpu.memory_space<vmem>>, %arg10: memref<1x128x32xbf16, #tpu.memory_space<vmem>>, %arg11: memref<1x6x32xf32, #tpu.memory_space<vmem>>, %arg12: memref<32x128xbf16, #tpu.memory_space<vmem>>, %arg13: memref<1x128xf32, #tpu.memory_space<vmem>>, %arg14: memref<2x8x128xf32, #tpu.memory_space<vmem>>, %arg15: memref<16x32xf32, #tpu.memory_space<vmem>>) attributes {dimension_semantics = [#tpu.dimension_semantics<parallel>, #tpu.dimension_semantics<arbitrary>], iteration_bounds = array<i64: 1, 2>, scalar_prefetch = 0 : i64, scratch_operands = 1 : i64, tpu.core_type = #tpu.core_type<tc>, window_params = [{transform_indices = @transform_0, window_bounds = array<i64: 2, 8, 64>}, {pipeline_mode = #tpu.pipeline_mode<synchronous>, transform_indices = @transform_1, window_bounds = array<i64: 64, 32>}, {pipeline_mode = #tpu.pipeline_mode<synchronous>, transform_indices = @transform_2, window_bounds = array<i64: 1, 32>}, {transform_indices = @transform_3, window_bounds = array<i64: 1, 32, 96>}, {transform_indices = @transform_4, window_bounds = array<i64: 1, 1, 96>}, {transform_indices = @transform_5, window_bounds = array<i64: 1, 32, 32>}, {transform_indices = @transform_6, window_bounds = array<i64: 1, 32, 128>}, {transform_indices = @transform_7, window_bounds = array<i64: 1, 1, 128>}, {transform_indices = @transform_8, window_bounds = array<i64: 1, 128, 32>}, {transform_indices = @transform_9, window_bounds = array<i64: 1, 6, 32>}, {pipeline_mode = #tpu.pipeline_mode<synchronous>, transform_indices = @transform_10, window_bounds = array<i64: 32, 128>}, {pipeline_mode = #tpu.pipeline_mode<synchronous>, transform_indices = @transform_11, window_bounds = array<i64: 1, 128>}, {transform_indices = @transform_12, window_bounds = array<i64: 2, 8, 128>}]} {
    %c0_i32 = arith.constant 0 : i32
    %0 = arith.cmpi eq, %arg1, %c0_i32 : i32
    %1 = arith.extui %0 : i1 to i32
    %c0_i32_0 = arith.constant 0 : i32
    %2 = arith.cmpi ne, %1, %c0_i32_0 : i32
    scf.if %2 {
      %c0_50 = arith.constant 0 : index
      %c0_51 = arith.constant 0 : index
      %c0_52 = arith.constant 0 : index
      %148 = vector.load %arg2[%c0_50, %c0_51, %c0_52] : memref<2x8x64xbf16, #tpu.memory_space<vmem>>, vector<2x8x64xbf16>
      %149 = vector.shape_cast %148 : vector<2x8x64xbf16> to vector<16x64xbf16>
      %c0_53 = arith.constant 0 : index
      %c0_54 = arith.constant 0 : index
      %150 = vector.load %arg3[%c0_53, %c0_54] : memref<64x32xbf16, #tpu.memory_space<vmem>>, vector<64x32xbf16>
      %cst_55 = arith.constant dense<0.000000e+00> : vector<16x32xf32>
      %151 = tpu.matmul %149, %150, %cst_55 {dimension_numbers = #tpu.dot_dimension_numbers<[1], [0], [0], [1], [0, 0, 1, 1], [], []>} : vector<16x64xbf16>, vector<64x32xbf16>, vector<16x32xf32> -> vector<16x32xf32>
      %c0_56 = arith.constant 0 : index
      %c0_57 = arith.constant 0 : index
      %152 = vector.load %arg4[%c0_56, %c0_57] : memref<1x32xf32, #tpu.memory_space<vmem>>, vector<1x32xf32>
      %153 = vector.broadcast %152 : vector<1x32xf32> to vector<16x32xf32>
      %154 = arith.addf %151, %153 : vector<16x32xf32>
      %c0_58 = arith.constant 0 : index
      %c0_59 = arith.constant 0 : index
      %155 = vector.load %arg15[%c0_58, %c0_59] : memref<16x32xf32, #tpu.memory_space<vmem>>, vector<16x32xf32>
      tpu.vector_store %arg15[%c0_58, %c0_59], %154 {strides = array<i32>} : memref<16x32xf32, #tpu.memory_space<vmem>>, vector<16x32xf32>,
    } else {
    }
    %c0 = arith.constant 0 : index
    %c0_1 = arith.constant 0 : index
    %3 = vector.load %arg15[%c0, %c0_1] : memref<16x32xf32, #tpu.memory_space<vmem>>, vector<16x32xf32>
    %4 = tpu.iota {dimensions = array<i32: 0>} : vector<8x8xi32>
    %5 = tpu.iota {dimensions = array<i32: 1>} : vector<8x8xi32>
    %6 = arith.cmpi sle, %5, %4 : vector<8x8xi32>
    %cst = arith.constant 0.000000e+00 : f32
    %cst_2 = arith.constant -1.000000e+30 : f32
    %7 = vector.broadcast %cst : f32 to vector<8x8xf32>
    %8 = vector.broadcast %cst_2 : f32 to vector<8x8xf32>
    %9 = arith.select %6, %7, %8 : vector<8x8xi1>, vector<8x8xf32>
    %10 = vector.shape_cast %9 : vector<8x8xf32> to vector<1x8x8xf32>
    %c0_3 = arith.constant 0 : index
    %c0_4 = arith.constant 0 : index
    %c0_5 = arith.constant 0 : index
    %11 = vector.load %arg11[%c0_3, %c0_4, %c0_5] : memref<1x6x32xf32, #tpu.memory_space<vmem>>, vector<1x6x32xf32>
    %12 = vector.shape_cast %11 : vector<1x6x32xf32> to vector<6x32xf32>
    %13 = vector.extract_strided_slice %12 {offsets = [0, 0], sizes = [1, 32], strides = [1, 1]} : vector<6x32xf32> to vector<1x32xf32>
    %14 = vector.extract_strided_slice %12 {offsets = [1, 0], sizes = [1, 32], strides = [1, 1]} : vector<6x32xf32> to vector<1x32xf32>
    %15 = vector.extract_strided_slice %12 {offsets = [2, 0], sizes = [1, 32], strides = [1, 1]} : vector<6x32xf32> to vector<1x32xf32>
    %16 = vector.extract_strided_slice %12 {offsets = [3, 0], sizes = [1, 32], strides = [1, 1]} : vector<6x32xf32> to vector<1x32xf32>
    %17 = vector.extract_strided_slice %12 {offsets = [4, 0], sizes = [1, 32], strides = [1, 1]} : vector<6x32xf32> to vector<1x32xf32>
    %18 = vector.extract_strided_slice %12 {offsets = [5, 0], sizes = [1, 32], strides = [1, 1]} : vector<6x32xf32> to vector<1x32xf32>
    %19 = arith.truncf %3 : vector<16x32xf32> to vector<16x32xbf16>
    %c0_6 = arith.constant 0 : index
    %c0_7 = arith.constant 0 : index
    %c0_8 = arith.constant 0 : index
    %20 = vector.load %arg5[%c0_6, %c0_7, %c0_8] : memref<1x32x96xbf16, #tpu.memory_space<vmem>>, vector<1x32x96xbf16>
    %21 = vector.shape_cast %20 : vector<1x32x96xbf16> to vector<32x96xbf16>
    %cst_9 = arith.constant dense<0.000000e+00> : vector<16x96xf32>
    %22 = tpu.matmul %19, %21, %cst_9 {dimension_numbers = #tpu.dot_dimension_numbers<[1], [0], [0], [1], [0, 0, 1, 1], [], []>} : vector<16x32xbf16>, vector<32x96xbf16>, vector<16x96xf32> -> vector<16x96xf32>
    %c0_10 = arith.constant 0 : index
    %c0_11 = arith.constant 0 : index
    %c0_12 = arith.constant 0 : index
    %23 = vector.load %arg6[%c0_10, %c0_11, %c0_12] : memref<1x1x96xf32, #tpu.memory_space<vmem>>, vector<1x1x96xf32>
    %24 = vector.shape_cast %23 : vector<1x1x96xf32> to vector<1x96xf32>
    %25 = vector.broadcast %24 : vector<1x96xf32> to vector<16x96xf32>
    %26 = arith.addf %22, %25 : vector<16x96xf32>
    %27 = vector.extract_strided_slice %26 {offsets = [0, 0], sizes = [8, 96], strides = [1, 1]} : vector<16x96xf32> to vector<8x96xf32>
    %28 = vector.shape_cast %27 : vector<8x96xf32> to vector<8x12x8xf32>
    %29 = tpu.transpose %28, [1, 0, 2] : vector<8x12x8xf32> -> vector<12x8x8xf32>
    %30 = vector.extract_strided_slice %29 {offsets = [0, 0, 0], sizes = [4, 8, 8], strides = [1, 1, 1]} : vector<12x8x8xf32> to vector<4x8x8xf32>
    %31 = arith.truncf %30 : vector<4x8x8xf32> to vector<4x8x8xbf16>
    %32 = vector.extract_strided_slice %29 {offsets = [4, 0, 0], sizes = [4, 8, 8], strides = [1, 1, 1]} : vector<12x8x8xf32> to vector<4x8x8xf32>
    %33 = arith.truncf %32 : vector<4x8x8xf32> to vector<4x8x8xbf16>
    %34 = vector.extract_strided_slice %29 {offsets = [8, 0, 0], sizes = [4, 8, 8], strides = [1, 1, 1]} : vector<12x8x8xf32> to vector<4x8x8xf32>
    %35 = arith.truncf %34 : vector<4x8x8xf32> to vector<4x8x8xbf16>
    "tpu.trace_start"() <{level = 10 : i32, message = "hsd,htd->hst"}> : () -> ()
    %cst_13 = arith.constant dense<0.000000e+00> : vector<4x8x8xf32>
    %36 = tpu.matmul %31, %33, %cst_13 {dimension_numbers = #tpu.dot_dimension_numbers<[2], [2], [1], [1], [0, 0, 0, 1, 1, 1], [0], [0]>} : vector<4x8x8xbf16>, vector<4x8x8xbf16>, vector<4x8x8xf32> -> vector<4x8x8xf32>
    "tpu.trace_stop"() : () -> ()
    %37 = vector.broadcast %10 : vector<1x8x8xf32> to vector<4x8x8xf32>
    %38 = arith.addf %36, %37 : vector<4x8x8xf32>
    %cst_14 = arith.constant dense<0xFF800000> : vector<4x8xf32>
    %39 = vector.multi_reduction <maximumf>, %38, %cst_14 [2] : vector<4x8x8xf32> to vector<4x8xf32>
    %40 = vector.shape_cast %39 : vector<4x8xf32> to vector<4x8x1xf32>
    %41 = vector.broadcast %40 : vector<4x8x1xf32> to vector<4x8x8xf32>
    %42 = arith.subf %38, %41 : vector<4x8x8xf32>
    %43 = math.exp %42 : vector<4x8x8xf32>
    %cst_15 = arith.constant dense<0.000000e+00> : vector<4x8xf32>
    %44 = vector.multi_reduction <add>, %43, %cst_15 [2] : vector<4x8x8xf32> to vector<4x8xf32>
    %45 = vector.shape_cast %44 : vector<4x8xf32> to vector<4x8x1xf32>
    %46 = tpu.reciprocal %45 {approx = true} : vector<4x8x1xf32> -> vector<4x8x1xf32>
    %47 = vector.broadcast %46 : vector<4x8x1xf32> to vector<4x8x8xf32>
    %48 = arith.mulf %43, %47 : vector<4x8x8xf32>
    %49 = arith.truncf %48 : vector<4x8x8xf32> to vector<4x8x8xbf16>
    "tpu.trace_start"() <{level = 10 : i32, message = "hst,htd->hsd"}> : () -> ()
    %cst_16 = arith.constant dense<0.000000e+00> : vector<4x8x8xf32>
    %50 = tpu.matmul %49, %35, %cst_16 {dimension_numbers = #tpu.dot_dimension_numbers<[2], [1], [1], [2], [0, 0, 0, 1, 1, 2], [0], [0]>} : vector<4x8x8xbf16>, vector<4x8x8xbf16>, vector<4x8x8xf32> -> vector<4x8x8xf32>
    "tpu.trace_stop"() : () -> ()
    %51 = tpu.transpose %50, [1, 0, 2] : vector<4x8x8xf32> -> vector<8x4x8xf32>
    %52 = vector.shape_cast %51 : vector<8x4x8xf32> to vector<8x32xf32>
    %53 = vector.extract_strided_slice %26 {offsets = [8, 0], sizes = [8, 96], strides = [1, 1]} : vector<16x96xf32> to vector<8x96xf32>
    %54 = vector.shape_cast %53 : vector<8x96xf32> to vector<8x12x8xf32>
    %55 = tpu.transpose %54, [1, 0, 2] : vector<8x12x8xf32> -> vector<12x8x8xf32>
    %56 = vector.extract_strided_slice %55 {offsets = [0, 0, 0], sizes = [4, 8, 8], strides = [1, 1, 1]} : vector<12x8x8xf32> to vector<4x8x8xf32>
    %57 = arith.truncf %56 : vector<4x8x8xf32> to vector<4x8x8xbf16>
    %58 = vector.extract_strided_slice %55 {offsets = [4, 0, 0], sizes = [4, 8, 8], strides = [1, 1, 1]} : vector<12x8x8xf32> to vector<4x8x8xf32>
    %59 = arith.truncf %58 : vector<4x8x8xf32> to vector<4x8x8xbf16>
    %60 = vector.extract_strided_slice %55 {offsets = [8, 0, 0], sizes = [4, 8, 8], strides = [1, 1, 1]} : vector<12x8x8xf32> to vector<4x8x8xf32>
    %61 = arith.truncf %60 : vector<4x8x8xf32> to vector<4x8x8xbf16>
    "tpu.trace_start"() <{level = 10 : i32, message = "hsd,htd->hst"}> : () -> ()
    %cst_17 = arith.constant dense<0.000000e+00> : vector<4x8x8xf32>
    %62 = tpu.matmul %57, %59, %cst_17 {dimension_numbers = #tpu.dot_dimension_numbers<[2], [2], [1], [1], [0, 0, 0, 1, 1, 1], [0], [0]>} : vector<4x8x8xbf16>, vector<4x8x8xbf16>, vector<4x8x8xf32> -> vector<4x8x8xf32>
    "tpu.trace_stop"() : () -> ()
    %63 = vector.broadcast %10 : vector<1x8x8xf32> to vector<4x8x8xf32>
    %64 = arith.addf %62, %63 : vector<4x8x8xf32>
    %cst_18 = arith.constant dense<0xFF800000> : vector<4x8xf32>
    %65 = vector.multi_reduction <maximumf>, %64, %cst_18 [2] : vector<4x8x8xf32> to vector<4x8xf32>
    %66 = vector.shape_cast %65 : vector<4x8xf32> to vector<4x8x1xf32>
    %67 = vector.broadcast %66 : vector<4x8x1xf32> to vector<4x8x8xf32>
    %68 = arith.subf %64, %67 : vector<4x8x8xf32>
    %69 = math.exp %68 : vector<4x8x8xf32>
    %cst_19 = arith.constant dense<0.000000e+00> : vector<4x8xf32>
    %70 = vector.multi_reduction <add>, %69, %cst_19 [2] : vector<4x8x8xf32> to vector<4x8xf32>
    %71 = vector.shape_cast %70 : vector<4x8xf32> to vector<4x8x1xf32>
    %72 = tpu.reciprocal %71 {approx = true} : vector<4x8x1xf32> -> vector<4x8x1xf32>
    %73 = vector.broadcast %72 : vector<4x8x1xf32> to vector<4x8x8xf32>
    %74 = arith.mulf %69, %73 : vector<4x8x8xf32>
    %75 = arith.truncf %74 : vector<4x8x8xf32> to vector<4x8x8xbf16>
    "tpu.trace_start"() <{level = 10 : i32, message = "hst,htd->hsd"}> : () -> ()
    %cst_20 = arith.constant dense<0.000000e+00> : vector<4x8x8xf32>
    %76 = tpu.matmul %75, %61, %cst_20 {dimension_numbers = #tpu.dot_dimension_numbers<[2], [1], [1], [2], [0, 0, 0, 1, 1, 2], [0], [0]>} : vector<4x8x8xbf16>, vector<4x8x8xbf16>, vector<4x8x8xf32> -> vector<4x8x8xf32>
    "tpu.trace_stop"() : () -> ()
    %77 = tpu.transpose %76, [1, 0, 2] : vector<4x8x8xf32> -> vector<8x4x8xf32>
    %78 = vector.shape_cast %77 : vector<8x4x8xf32> to vector<8x32xf32>
    %79 = tpu.concatenate %52, %78 in 0 : vector<8x32xf32>, vector<8x32xf32> -> vector<16x32xf32>
    %80 = arith.truncf %79 : vector<16x32xf32> to vector<16x32xbf16>
    %c0_21 = arith.constant 0 : index
    %c0_22 = arith.constant 0 : index
    %c0_23 = arith.constant 0 : index
    %81 = vector.load %arg7[%c0_21, %c0_22, %c0_23] : memref<1x32x32xbf16, #tpu.memory_space<vmem>>, vector<1x32x32xbf16>
    %82 = vector.shape_cast %81 : vector<1x32x32xbf16> to vector<32x32xbf16>
    %cst_24 = arith.constant dense<0.000000e+00> : vector<16x32xf32>
    %83 = tpu.matmul %80, %82, %cst_24 {dimension_numbers = #tpu.dot_dimension_numbers<[1], [0], [0], [1], [0, 0, 1, 1], [], []>} : vector<16x32xbf16>, vector<32x32xbf16>, vector<16x32xf32> -> vector<16x32xf32>
    %84 = vector.broadcast %13 : vector<1x32xf32> to vector<16x32xf32>
    %85 = arith.addf %83, %84 : vector<16x32xf32>
    %86 = arith.addf %85, %3 : vector<16x32xf32>
    %cst_25 = arith.constant dense<0.000000e+00> : vector<16xf32>
    %87 = vector.multi_reduction <add>, %86, %cst_25 [1] : vector<16x32xf32> to vector<16xf32>
    %88 = vector.shape_cast %87 : vector<16xf32> to vector<16x1xf32>
    %cst_26 = arith.constant 3.200000e+01 : f32
    %89 = vector.broadcast %cst_26 : f32 to vector<16x1xf32>
    %90 = arith.divf %88, %89 : vector<16x1xf32>
    %91 = vector.broadcast %90 : vector<16x1xf32> to vector<16x32xf32>
    %92 = arith.subf %86, %91 : vector<16x32xf32>
    %93 = arith.mulf %92, %92 : vector<16x32xf32>
    %cst_27 = arith.constant dense<0.000000e+00> : vector<16xf32>
    %94 = vector.multi_reduction <add>, %93, %cst_27 [1] : vector<16x32xf32> to vector<16xf32>
    %95 = vector.shape_cast %94 : vector<16xf32> to vector<16x1xf32>
    %cst_28 = arith.constant 3.200000e+01 : f32
    %96 = vector.broadcast %cst_28 : f32 to vector<16x1xf32>
    %97 = arith.divf %95, %96 : vector<16x1xf32>
    %cst_29 = arith.constant 9.99999974E-6 : f32
    %98 = vector.broadcast %cst_29 : f32 to vector<16x1xf32>
    %99 = arith.addf %97, %98 : vector<16x1xf32>
    %100 = math.rsqrt %99 : vector<16x1xf32>
    %101 = vector.broadcast %100 : vector<16x1xf32> to vector<16x32xf32>
    %102 = arith.mulf %92, %101 : vector<16x32xf32>
    %103 = vector.broadcast %14 : vector<1x32xf32> to vector<16x32xf32>
    %104 = arith.mulf %102, %103 : vector<16x32xf32>
    %105 = vector.broadcast %15 : vector<1x32xf32> to vector<16x32xf32>
    %106 = arith.addf %104, %105 : vector<16x32xf32>
    %107 = arith.truncf %106 : vector<16x32xf32> to vector<16x32xbf16>
    %c0_30 = arith.constant 0 : index
    %c0_31 = arith.constant 0 : index
    %c0_32 = arith.constant 0 : index
    %108 = vector.load %arg8[%c0_30, %c0_31, %c0_32] : memref<1x32x128xbf16, #tpu.memory_space<vmem>>, vector<1x32x128xbf16>
    %109 = vector.shape_cast %108 : vector<1x32x128xbf16> to vector<32x128xbf16>
    %cst_33 = arith.constant dense<0.000000e+00> : vector<16x128xf32>
    %110 = tpu.matmul %107, %109, %cst_33 {dimension_numbers = #tpu.dot_dimension_numbers<[1], [0], [0], [1], [0, 0, 1, 1], [], []>} : vector<16x32xbf16>, vector<32x128xbf16>, vector<16x128xf32> -> vector<16x128xf32>
    %c0_34 = arith.constant 0 : index
    %c0_35 = arith.constant 0 : index
    %c0_36 = arith.constant 0 : index
    %111 = vector.load %arg9[%c0_34, %c0_35, %c0_36] : memref<1x1x128xf32, #tpu.memory_space<vmem>>, vector<1x1x128xf32>
    %112 = vector.shape_cast %111 : vector<1x1x128xf32> to vector<1x128xf32>
    %113 = vector.broadcast %112 : vector<1x128xf32> to vector<16x128xf32>
    %114 = arith.addf %110, %113 : vector<16x128xf32>
    %cst_37 = arith.constant 0.000000e+00 : f32
    %115 = vector.broadcast %cst_37 : f32 to vector<16x128xf32>
    %116 = arith.maximumf %114, %115 : vector<16x128xf32>
    %117 = arith.truncf %116 : vector<16x128xf32> to vector<16x128xbf16>
    %c0_38 = arith.constant 0 : index
    %c0_39 = arith.constant 0 : index
    %c0_40 = arith.constant 0 : index
    %118 = vector.load %arg10[%c0_38, %c0_39, %c0_40] : memref<1x128x32xbf16, #tpu.memory_space<vmem>>, vector<1x128x32xbf16>
    %119 = vector.shape_cast %118 : vector<1x128x32xbf16> to vector<128x32xbf16>
    %cst_41 = arith.constant dense<0.000000e+00> : vector<16x32xf32>
    %120 = tpu.matmul %117, %119, %cst_41 {dimension_numbers = #tpu.dot_dimension_numbers<[1], [0], [0], [1], [0, 0, 1, 1], [], []>} : vector<16x128xbf16>, vector<128x32xbf16>, vector<16x32xf32> -> vector<16x32xf32>
    %121 = vector.broadcast %16 : vector<1x32xf32> to vector<16x32xf32>
    %122 = arith.addf %120, %121 : vector<16x32xf32>
    %123 = arith.addf %122, %106 : vector<16x32xf32>
    %cst_42 = arith.constant dense<0.000000e+00> : vector<16xf32>
    %124 = vector.multi_reduction <add>, %123, %cst_42 [1] : vector<16x32xf32> to vector<16xf32>
    %125 = vector.shape_cast %124 : vector<16xf32> to vector<16x1xf32>
    %cst_43 = arith.constant 3.200000e+01 : f32
    %126 = vector.broadcast %cst_43 : f32 to vector<16x1xf32>
    %127 = arith.divf %125, %126 : vector<16x1xf32>
    %128 = vector.broadcast %127 : vector<16x1xf32> to vector<16x32xf32>
    %129 = arith.subf %123, %128 : vector<16x32xf32>
    %130 = arith.mulf %129, %129 : vector<16x32xf32>
    %cst_44 = arith.constant dense<0.000000e+00> : vector<16xf32>
    %131 = vector.multi_reduction <add>, %130, %cst_44 [1] : vector<16x32xf32> to vector<16xf32>
    %132 = vector.shape_cast %131 : vector<16xf32> to vector<16x1xf32>
    %cst_45 = arith.constant 3.200000e+01 : f32
    %133 = vector.broadcast %cst_45 : f32 to vector<16x1xf32>
    %134 = arith.divf %132, %133 : vector<16x1xf32>
    %cst_46 = arith.constant 9.99999974E-6 : f32
    %135 = vector.broadcast %cst_46 : f32 to vector<16x1xf32>
    %136 = arith.addf %134, %135 : vector<16x1xf32>
    %137 = math.rsqrt %136 : vector<16x1xf32>
    %138 = vector.broadcast %137 : vector<16x1xf32> to vector<16x32xf32>
    %139 = arith.mulf %129, %138 : vector<16x32xf32>
    %140 = vector.broadcast %17 : vector<1x32xf32> to vector<16x32xf32>
    %141 = arith.mulf %139, %140 : vector<16x32xf32>
    %142 = vector.broadcast %18 : vector<1x32xf32> to vector<16x32xf32>
    %143 = arith.addf %141, %142 : vector<16x32xf32>
    %c0_47 = arith.constant 0 : index
    %c0_48 = arith.constant 0 : index
    %144 = vector.load %arg15[%c0_47, %c0_48] : memref<16x32xf32, #tpu.memory_space<vmem>>, vector<16x32xf32>
    tpu.vector_store %arg15[%c0_47, %c0_48], %143 {strides = array<i32>} : memref<16x32xf32, #tpu.memory_space<vmem>>, vector<16x32xf32>,
    %c1_i32 = arith.constant 1 : i32
    %145 = arith.cmpi eq, %arg1, %c1_i32 : i32
    %146 = arith.extui %145 : i1 to i32
    %c0_i32_49 = arith.constant 0 : i32
    %147 = arith.cmpi ne, %146, %c0_i32_49 : i32
    scf.if %147 {
      %148 = arith.truncf %143 : vector<16x32xf32> to vector<16x32xbf16>
      %c0_50 = arith.constant 0 : index
      %c0_51 = arith.constant 0 : index
      %149 = vector.load %arg12[%c0_50, %c0_51] : memref<32x128xbf16, #tpu.memory_space<vmem>>, vector<32x128xbf16>
      %cst_52 = arith.constant dense<0.000000e+00> : vector<16x128xf32>
      %150 = tpu.matmul %148, %149, %cst_52 {dimension_numbers = #tpu.dot_dimension_numbers<[1], [0], [0], [1], [0, 0, 1, 1], [], []>} : vector<16x32xbf16>, vector<32x128xbf16>, vector<16x128xf32> -> vector<16x128xf32>
      %c0_53 = arith.constant 0 : index
      %c0_54 = arith.constant 0 : index
      %151 = vector.load %arg13[%c0_53, %c0_54] : memref<1x128xf32, #tpu.memory_space<vmem>>, vector<1x128xf32>
      %152 = vector.broadcast %151 : vector<1x128xf32> to vector<16x128xf32>
      %153 = arith.addf %150, %152 : vector<16x128xf32>
      %cst_55 = arith.constant dense<0xFF800000> : vector<16xf32>
      %154 = vector.multi_reduction <maximumf>, %153, %cst_55 [1] : vector<16x128xf32> to vector<16xf32>
      %155 = vector.shape_cast %154 : vector<16xf32> to vector<16x1xf32>
      %156 = vector.broadcast %155 : vector<16x1xf32> to vector<16x128xf32>
      %157 = arith.subf %153, %156 : vector<16x128xf32>
      %158 = math.exp %157 : vector<16x128xf32>
      %cst_56 = arith.constant dense<0.000000e+00> : vector<16xf32>
      %159 = vector.multi_reduction <add>, %158, %cst_56 [1] : vector<16x128xf32> to vector<16xf32>
      %160 = vector.shape_cast %159 : vector<16xf32> to vector<16x1xf32>
      %161 = math.log %160 : vector<16x1xf32>
      %162 = arith.addf %155, %161 : vector<16x1xf32>
      %163 = vector.broadcast %162 : vector<16x1xf32> to vector<16x128xf32>
      %164 = arith.subf %153, %163 : vector<16x128xf32>
      %165 = vector.shape_cast %164 : vector<16x128xf32> to vector<2x8x128xf32>
      %c0_57 = arith.constant 0 : index
      %c0_58 = arith.constant 0 : index
      %c0_59 = arith.constant 0 : index
      %166 = vector.load %arg14[%c0_57, %c0_58, %c0_59] : memref<2x8x128xf32, #tpu.memory_space<vmem>>, vector<2x8x128xf32>
      tpu.vector_store %arg14[%c0_57, %c0_58, %c0_59], %165 {strides = array<i32>} : memref<2x8x128xf32, #tpu.memory_space<vmem>>, vector<2x8x128xf32>,
    } else {
    }
    return
  }
  func.func @transform_0(%arg0: i32, %arg1: i32) -> (i32, i32, i32) {
    %c0_i32 = arith.constant 0 : i32
    %c0_i32_0 = arith.constant 0 : i32
    %c0_i32_1 = arith.constant 0 : i32
    return %arg0, %c0_i32, %c0_i32_0 : i32, i32, i32
  }
  func.func @transform_1(%arg0: i32, %arg1: i32) -> (i32, i32) {
    %c0_i32 = arith.constant 0 : i32
    %c0_i32_0 = arith.constant 0 : i32
    %c0_i32_1 = arith.constant 0 : i32
    return %c0_i32, %c0_i32_0 : i32, i32
  }
  func.func @transform_2(%arg0: i32, %arg1: i32) -> (i32, i32) {
    %c0_i32 = arith.constant 0 : i32
    %c0_i32_0 = arith.constant 0 : i32
    %c0_i32_1 = arith.constant 0 : i32
    return %c0_i32, %c0_i32_0 : i32, i32
  }
  func.func @transform_3(%arg0: i32, %arg1: i32) -> (i32, i32, i32) {
    %c0_i32 = arith.constant 0 : i32
    %c0_i32_0 = arith.constant 0 : i32
    %c0_i32_1 = arith.constant 0 : i32
    return %arg1, %c0_i32, %c0_i32_0 : i32, i32, i32
  }
  func.func @transform_4(%arg0: i32, %arg1: i32) -> (i32, i32, i32) {
    %c0_i32 = arith.constant 0 : i32
    %c0_i32_0 = arith.constant 0 : i32
    %c0_i32_1 = arith.constant 0 : i32
    return %arg1, %c0_i32, %c0_i32_0 : i32, i32, i32
  }
  func.func @transform_5(%arg0: i32, %arg1: i32) -> (i32, i32, i32) {
    %c0_i32 = arith.constant 0 : i32
    %c0_i32_0 = arith.constant 0 : i32
    %c0_i32_1 = arith.constant 0 : i32
    return %arg1, %c0_i32, %c0_i32_0 : i32, i32, i32
  }
  func.func @transform_6(%arg0: i32, %arg1: i32) -> (i32, i32, i32) {
    %c0_i32 = arith.constant 0 : i32
    %c0_i32_0 = arith.constant 0 : i32
    %c0_i32_1 = arith.constant 0 : i32
    return %arg1, %c0_i32, %c0_i32_0 : i32, i32, i32
  }
  func.func @transform_7(%arg0: i32, %arg1: i32) -> (i32, i32, i32) {
    %c0_i32 = arith.constant 0 : i32
    %c0_i32_0 = arith.constant 0 : i32
    %c0_i32_1 = arith.constant 0 : i32
    return %arg1, %c0_i32, %c0_i32_0 : i32, i32, i32
  }
  func.func @transform_8(%arg0: i32, %arg1: i32) -> (i32, i32, i32) {
    %c0_i32 = arith.constant 0 : i32
    %c0_i32_0 = arith.constant 0 : i32
    %c0_i32_1 = arith.constant 0 : i32
    return %arg1, %c0_i32, %c0_i32_0 : i32, i32, i32
  }
  func.func @transform_9(%arg0: i32, %arg1: i32) -> (i32, i32, i32) {
    %c0_i32 = arith.constant 0 : i32
    %c0_i32_0 = arith.constant 0 : i32
    %c0_i32_1 = arith.constant 0 : i32
    return %arg1, %c0_i32, %c0_i32_0 : i32, i32, i32
  }
  func.func @transform_10(%arg0: i32, %arg1: i32) -> (i32, i32) {
    %c0_i32 = arith.constant 0 : i32
    %c0_i32_0 = arith.constant 0 : i32
    %c0_i32_1 = arith.constant 0 : i32
    return %c0_i32, %c0_i32_0 : i32, i32
  }
  func.func @transform_11(%arg0: i32, %arg1: i32) -> (i32, i32) {
    %c0_i32 = arith.constant 0 : i32
    %c0_i32_0 = arith.constant 0 : i32
    %c0_i32_1 = arith.constant 0 : i32
    return %c0_i32, %c0_i32_0 : i32, i32
  }
  func.func @transform_12(%arg0: i32, %arg1: i32) -> (i32, i32, i32) {
    %c0_i32 = arith.constant 0 : i32
    %c0_i32_0 = arith.constant 0 : i32
    %c0_i32_1 = arith.constant 0 : i32
    return %arg0, %c0_i32, %c0_i32_0 : i32, i32, i32
  }
}

</mosaic_0001>

<bundles_post_ra>
// kernel: gtransformer_forward.1
= control target key start
LH: loop header
LB: loop body
LE: loop exit
PB: predicated region body
PF: predicated region fallthrough
CT: control target
= control target key end

     0   :  { %s4494_s0 = inlined_call_operand.vmem [shape: bf16[2,8,64], index: 0, kind: input, shape index: {}]   ;;  %s4495_s1 = inlined_call_operand.vmem [shape: bf16[64,32], index: 1, kind: input, shape index: {}]   ;;  %s4496_s2 = inlined_call_operand.vmem [shape: f32[1,32], index: 2, kind: input, shape index: {}]   ;;  %s4497_s3 = inlined_call_operand.vmem [shape: bf16[2,32,96], index: 3, kind: input, shape index: {}]   ;;  %s4498_s4 = inlined_call_operand.vmem [shape: f32[2,1,96], index: 4, kind: input, shape index: {}]   ;;  %s4499_s5 = inlined_call_operand.vmem [shape: bf16[2,32,32], index: 5, kind: input, shape index: {}]   ;;  %s4500_s6 = inlined_call_operand.vmem [shape: bf16[2,32,128], index: 6, kind: input, shape index: {}]   ;;  %s4501_s7 = inlined_call_operand.vmem [shape: f32[2,1,128], index: 7, kind: input, shape index: {}]   ;;  %s4502_s8 = inlined_call_operand.vmem [shape: bf16[2,128,32], index: 8, kind: input, shape index: {}]   ;;  %s4503_s9 = inlined_call_operand.vmem [shape: f32[2,6,32], index: 9, kind: input, shape index: {}]   ;;  %s4504_s10 = inlined_call_operand.vmem [shape: bf16[32,128], index: 10, kind: input, shape index: {}]   ;;  %s4505_s11 = inlined_call_operand.vmem [shape: f32[1,128], index: 11, kind: input, shape index: {}]   ;;  %s4506_s12 = inlined_call_operand.hbm [shape: f32[2,8,128], index: 12, kind: output, shape index: {}]  }
   0x1   :  { %4508 = sst [smem:[#allocation8_spill]] %s4497_s3 }
   0x2   :  { %4509 = sst [smem:[#allocation9_spill]] %s4506_s12 }
   0x3   :  { %17 = vsyncpa [#allocation4], 0  ;;  %s3930_s21 = smov 0   ;;  %s3932_s22 = smov 0  }
   0x4   :  { %s3934_s23 = smov 0  }
   0x5 LB: > { %4510 = sst [smem:[#allocation6_spill]] %s3834_s22  ;;  %s32_s25 = sadd.s32 1, %s3834_s22  ;;  %s3838_s23 = sphi %s3934_s23, %s23_s23   ;;  %s3834_s22 = sphi %s3932_s22, %s4518_s22   ;;  %s3830_s21 = sphi %s3930_s21, %s4517_s21  }
   0x6   : > { %p33_p0 = scmp.ge.s32.totalorder %s32_s25, 2  ;;  %p3339_p1 = scmp.ge.s32.totalorder %s3838_s23, 1 }
   0x7   : > { %p441_p2 = scmp.lt.s32.totalorder %s3838_s23, 3 }
   0x8   : > { %s4520_s25 = smov (%p33_p0, %s32_s25), 0 }
   0x9   : > { %4511 = sst [smem:[#allocation7_spill]] %s4520_s25  ;;  %p442_p3 = pnand %p3339_p1, %p441_p2 }
   0xa   : > { %p514_p4 = scmp.lt.s32.totalorder (!%p442_p3), %s3830_s21, 1  ;;  %s4512_s3 = sld [smem:[#allocation8_spill]] (!%p442_p3) }
   0xb   : > { %445 = sbr.rel (%p442_p3) target bundleno = 3807 (0xedf), region = 68  ;;  %p3349_p5 = scmp.ne.s32.totalorder (!%p442_p3), %s3830_s21, 0 }
  0x10   : > { %s3953_s26 = scalar_select %p514_p4, %s3830_s21, 1 }
  0x12   : > { %s3425_s27 = sshll.u32 %s3953_s26, 4  ;;  %s534_s28 = scalar_lea.vmem %s4501_s7, %s3953_s26 }
  0x13   : > { %s3963_s15 = scalar_lea.vmem %s4512_s3, %s3425_s27  ;;  %s3968_s18 = scalar_lea.vmem %s4499_s5, %s3425_s27 }
  0x14   : > { %s3973_s24 = scalar_lea.vmem %s4500_s6, %s3425_s27  ;;  %s3428_s29 = sshll.u32 %s3953_s26, 6 }
  0x15   : > { %s3348_s30 = sshll.u32 %s3953_s26, 3  ;;  %s3984_s14 = scalar_lea.vmem %s4502_s8, %s3428_s29 }
  0x16   : > { %s3989_s17 = scalar_lea.vmem %s4503_s9, %s3348_s30  ;;  %549 = sbr.rel (%p3349_p5) target bundleno = 244 (0xf4), region = 72 }
  0x1b   : > { %v3702_v0 = vld [vmem:[%s4495_s1 + $0x18] sm:$0xff]   ;;  %v3840_v1 = vmov 0.0   ;;  %v3703_v2 = vld [vmem:[%s4495_s1 + $0x10] sm:$0xff]   ;;  %vm3841_vm0 = vmmov 0   ;;  %v3704_v3 = vld [vmem:[%s4495_s1 + $0x8] sm:$0xff]   ;;  %vm596_vm1 = vcmask 523264  }
  0x1c   : > { %3487 = vmatprep.subr.bf16.mxu0 %v3840_v1  ;;  %3495 = vmatprep.mubr.msk.bf16.mxu0 %vm3841_vm0, %v3840_v1  ;;  %v3705_v4 = vld [vmem:[%s4495_s1] sm:$0xff]   ;;  %vm641_vm2 = vcmask 261120  }
  0x1d   : > { %3488 = vmatpush3.bf16.msra.mxu0 %v3702_v0  ;;  %v3706_v5 = vld [vmem:[%s4494_s0] sm:$0xff]  }
  0x1e   : > { %3489 = vmatprep.subr.bf16.mxu0 %v3840_v1  ;;  %v3350_v6 = vld [vmem:[%s4496_s2] ss:$0 sm:$0xff] }
  0x21   : > { %3490 = vmatpush3.bf16.msra.mxu0 %v3703_v2 }
  0x22   : > { %3491 = vmatprep.subr.bf16.mxu0 %v3840_v1 }
  0x25   : > { %3492 = vmatpush3.bf16.msra.mxu0 %v3704_v3 }
  0x26   : > { %3493 = vmatprep.subr.bf16.mxu0 %v3840_v1 }
  0x29   : > { %3494 = vmatpush3.bf16.msra.mxu0 %v3705_v4 }
  0x2c   : > { %3496 = vmatmul.mubr.msk.bf16.vlgmr.msra.gmra.mxu0 %vm596_vm1, %v3706_v5 }
  0xec   : > { %v634_v7 = vpop.f32.mrf.mxu0 }
  0xed   : > { %v635_v8 = vadd.f32 %v3350_v6, %v634_v7 }
  0xee   : > { %v3497_v9 = vpop.f32.mrf.mxu0 }
  0xef   : > { %642 = vst.msk [vmem:[#allocation2] sm:$0xff] %vm641_vm2, %v635_v8 }
  0xf0   : > { %v637_v10 = vpop.f32.mrf.mxu0 }
  0xf1   : > { %v638_v11 = vadd.f32 %v3350_v6, %v637_v10 }
  0xf2   : > { %v3498_v12 = vpop.f32.mrf.mxu0 }
  0xf3   : > { %643 = vst.msk [vmem:[#allocation2 + $0x8] sm:$0xff] %vm641_vm2, %v638_v11 }
  0xf4 PF: > { %v3722_v13 = vld [vmem:[%s3963_s15 + $0x8] sm:$0xff]   ;;  %v3842_v14 = vmov 0.0   ;;  %v3723_v15 = vld [vmem:[%s3963_s15] sm:$0xff]   ;;  %vm3843_vm3 = vmmov 0   ;;  %vm677_vm4 = vcmask 261120   ;;  %s4513_s22 = scalar_lea.vmem %s4498_s4, %s3953_s26  ;;  %s3844_s25 = smov 80   ;;  %v646_v26 = vlaneseq }
  0xf5   : > { %3499 = vmatprep.subr.bf16.mxu0 %v3842_v14  ;;  %3519 = vmatprep.subr.bf16.mxu1 %v3842_v14  ;;  %v3357_v19 = vld [vmem:[%s4513_s22] ss:$0 sm:$0xff]  ;;  %s3845_s3 = smov 96   ;;  %s3846_s12 = smov 72   ;;  %v3851_v27 = vmov 1983009808  }
  0xf6   : > { %3500 = vmatpush3.bf16.msra.mxu0 %v3722_v13  ;;  %3503 = vmatprep.mubr.msk.bf16.mxu0 %vm3843_vm3, %v3842_v14  ;;  %v644_v16 = vld [vmem:[#allocation2] sm:$0xff]  ;;  %s3847_s30 = smov 88   ;;  %s3848_s20 = smov 112   ;;  %v759_v28 = vunpack.c.l.s4 %v3851_v27  ;;  %v3852_v29 = vmov 1934713408   ;;  %v4047_v31 = vshrl.u32 %v646_v26, 7 }
  0xf7   : > { %3501 = vmatprep.subr.bf16.mxu0 %v3842_v14  ;;  %3521 = vmatprep.mubr.msk.bf16.mxu1 %vm3843_vm3, %v3842_v14  ;;  %s3849_s29 = smov 120   ;;  %s3850_s13 = smov 104   ;;  %v823_v30 = vunpack.c.l.s4 %v3852_v29  ;;  %vm1176_vm5 = vcmask 64512   ;;  %vm1412_vm7 = vcmask 1043456   ;;  %vm1743_vm8 = vcmask 130048  }
  0xf8   : > { %v760_v32 = vunpack.c.0.s8 %v759_v28  ;;  %s3854_s16 = smov 56   ;;  %s3855_s27 = smov 64   ;;  %vm1745_vm9 = vcmask 195584  }
  0xf9   : > { %v824_v35 = vunpack.c.0.s8 %v823_v30  ;;  %s3856_s15 = smov 48   ;;  %s3857_s19 = smov 40  }
  0xfa   : > { %v645_v17 = vld [vmem:[#allocation2 + $0x8] sm:$0xff]  ;;  %3502 = vmatpush3.bf16.msra.mxu0 %v3723_v15  ;;  %v4050_v36 = vsub.s32 %v760_v32, %v4047_v31  ;;  %s3859_s22 = smov 8   ;;  %p3416_p6 = scmp.ne.s32.totalorder %s3830_s21, 1 }
  0xfb   : > { %v653_v18 = vpack.c.bf16 %v645_v17, %v644_v16  ;;  %3507 = vmatprep.subr.bf16.mxu0 %v3842_v14  ;;  %v4053_v43 = vsub.s32 %v824_v35, %v4047_v31 }
  0xfd   : > { %3504 = vmatmul.mubr.msk.bf16.vlgmr.msra.gmra.mxu0 %vm677_vm4, %v653_v18 }
  0xfe   : > { %3509 = vmatprep.mubr.msk.bf16.mxu0 %vm3843_vm3, %v3842_v14 }
 0x1bd   : > { %v715_v20 = vpop.f32.mrf.mxu0 }
 0x1be   : > { %v4028_v21 = vadd.f32 %v3357_v19, %v715_v20 }
 0x1bf   : > { %v3505_v22 = vpop.f32.mrf.mxu0 }
 0x1c0   : > { %738 = vrot.lane.b32.xlu1 %v4028_v21, %s3844_s25  ;;  %732 = vrot.lane.b32.xlu0 %v4028_v21, %s3845_s3 }
 0x1c1   : > { %v718_v23 = vpop.f32.mrf.mxu0 }
 0x1c2   : > { %v4034_v24 = vadd.f32 %v3357_v19, %v718_v23 }
 0x1c3   : > { %v3506_v25 = vpop.f32.mrf.mxu0 }
 0x1c4   : > { %741 = vrot.lane.b32.xlu1 %v4028_v21, %s3846_s12  ;;  %735 = vrot.lane.b32.xlu0 %v4028_v21, %s3847_s30 }
 0x1c8   : > { %726 = vrot.lane.b32.xlu1 %v4028_v21, %s3848_s20  ;;  %723 = vrot.lane.b32.xlu0 %v4028_v21, %s3849_s29 }
 0x1cc   : > { %729 = vrot.lane.b32.xlu0 %v4028_v21, %s3850_s13 }
 0x232   : > { %v739_v33 = vpop.permute.xlu1 %738  ;;  %v733_v34 = vpop.permute.xlu0 %732 }
 0x233   : > { %v788_v37 = vcombine.low %v733_v34, %v739_v33  ;;  %v789_v38 = vcombine.high %v733_v34, %v739_v33 }
 0x235   : > { %v796_v44 = vrot.slane %v788_v37, %v4050_v36  ;;  %v803_v45 = vrot.slane %v789_v38, %v4050_v36 }
 0x236   : > { %v742_v39 = vpop.permute.xlu1 %741  ;;  %v736_v40 = vpop.permute.xlu0 %735 }
 0x237   : > { %v804_v41 = vcombine.low %v736_v40, %v742_v39  ;;  %v805_v42 = vcombine.high %v736_v40, %v742_v39 }
 0x239   : > { %v812_v46 = vrot.slane %v804_v41, %v4050_v36  ;;  %v819_v47 = vrot.slane %v805_v42, %v4050_v36 }
 0x23a   : > { %v724_v48 = vpop.permute.xlu0 %723  ;;  %v727_v53 = vpop.permute.xlu1 %726 }
 0x23b   : > { %v852_v49 = vcombine.low %v796_v44, %v812_v46  ;;  %v853_v50 = vcombine.high %v796_v44, %v812_v46  ;;  %v868_v51 = vcombine.low %v803_v45, %v819_v47  ;;  %v869_v52 = vcombine.high %v803_v45, %v819_v47 }
 0x23c   : > { %v756_v58 = vcombine.low %v4028_v21, %v727_v53  ;;  %v757_v59 = vcombine.high %v4028_v21, %v727_v53 }
 0x23d   : > { %v860_v54 = vrot.slane %v852_v49, %v4053_v43  ;;  %v867_v55 = vrot.slane %v853_v50, %v4053_v43  ;;  %v876_v56 = vrot.slane %v868_v51, %v4053_v43  ;;  %v883_v57 = vrot.slane %v869_v52, %v4053_v43 }
 0x23e   : > { %v730_v60 = vpop.permute.xlu0 %729  ;;  %v764_v7 = vrot.slane %v756_v58, %v4050_v36  ;;  %v771_v8 = vrot.slane %v757_v59, %v4050_v36 }
 0x23f   : > { %v3362_v61 = vcombine.low %v860_v54, %v867_v55  ;;  %v3364_v62 = vcombine.high %v860_v54, %v867_v55  ;;  %v3366_v63 = vcombine.low %v876_v56, %v883_v57  ;;  %v3368_v0 = vcombine.high %v876_v56, %v883_v57 }
 0x240   : > { %v772_v1 = vcombine.low %v724_v48, %v730_v60  ;;  %v773_v2 = vcombine.high %v724_v48, %v730_v60 }
 0x241   : > { %v975_v3 = vrot.slane %v3362_v61, %v4050_v36  ;;  %v991_v4 = vrot.slane %v3364_v62, %v4050_v36  ;;  %v1007_v5 = vrot.slane %v3366_v63, %v4050_v36  ;;  %v1023_v6 = vrot.slane %v3368_v0, %v4050_v36 }
 0x242   : > { %v780_v9 = vrot.slane %v772_v1, %v4050_v36  ;;  %v787_v10 = vrot.slane %v773_v2, %v4050_v36 }
 0x243   : > { %v1040_v11 = vcombine.low %v975_v3, %v991_v4  ;;  %v1072_v12 = vcombine.low %v1007_v5, %v1023_v6  ;;  %v1041_v13 = vcombine.high %v975_v3, %v991_v4  ;;  %v1073_v15 = vcombine.high %v1007_v5, %v1023_v6 }
 0x244   : > { %v820_v16 = vcombine.low %v764_v7, %v780_v9  ;;  %v821_v17 = vcombine.high %v764_v7, %v780_v9  ;;  %v836_v18 = vcombine.low %v771_v8, %v787_v10  ;;  %v837_v19 = vcombine.high %v771_v8, %v787_v10 }
 0x245   : > { %v1048_v20 = vrot.slane %v1040_v11, %v4053_v43  ;;  %v1080_v22 = vrot.slane %v1072_v12, %v4053_v43  ;;  %v1055_v23 = vrot.slane %v1041_v13, %v4053_v43  ;;  %v1087_v25 = vrot.slane %v1073_v15, %v4053_v43 }
 0x246   : > { %v828_v27 = vrot.slane %v820_v16, %v4053_v43  ;;  %v835_v28 = vrot.slane %v821_v17, %v4053_v43  ;;  %v844_v29 = vrot.slane %v836_v18, %v4053_v43  ;;  %v851_v30 = vrot.slane %v837_v19, %v4053_v43 }
 0x247   : > { %v1092_v32 = vcombine.low %v1048_v20, %v1080_v22  ;;  %v1094_v33 = vcombine.low %v1055_v23, %v1087_v25  ;;  %v1093_v48 = vcombine.high %v1048_v20, %v1080_v22  ;;  %v1095_v63 = vcombine.high %v1055_v23, %v1087_v25 }
 0x248   : > { %v3361_v34 = vcombine.low %v828_v27, %v835_v28  ;;  %v3363_v35 = vcombine.high %v828_v27, %v835_v28  ;;  %v3365_v37 = vcombine.low %v844_v29, %v851_v30  ;;  %v3367_v38 = vcombine.high %v844_v29, %v851_v30 }
 0x249   : > { %v1168_v39 = vpack.c.bf16 %v1092_v32, %v1092_v32  ;;  %v1170_v40 = vpack.c.bf16 %v1094_v33, %v1094_v33  ;;  %v1169_v58 = vpack.c.bf16 %v1093_v48, %v1093_v48  ;;  %v1171_v1 = vpack.c.bf16 %v1095_v63, %v1095_v63 }
 0x24a   : > { %v968_v41 = vrot.slane %v3361_v34, %v4050_v36  ;;  %v984_v42 = vrot.slane %v3363_v35, %v4050_v36  ;;  %v1000_v44 = vrot.slane %v3365_v37, %v4050_v36  ;;  %v1016_v45 = vrot.slane %v3367_v38, %v4050_v36 }
 0x24b   : > { %v1181_v46 = vsel %vm1176_vm5, %v1168_v39, 0  ;;  %v1273_v47 = vsel %vm1176_vm5, %v1170_v40, 0  ;;  %v1227_v62 = vsel %vm1176_vm5, %v1169_v58, 0  ;;  %v1319_v3 = vsel %vm1176_vm5, %v1171_v1, 0 }
 0x24c   : > { %v1024_v49 = vcombine.low %v968_v41, %v984_v42  ;;  %v1056_v50 = vcombine.low %v1000_v44, %v1016_v45  ;;  %3508 = vmatpush3.bf16.xpose.msra.mxu0 %v1181_v46  ;;  %3520 = vmatpush3.bf16.xpose.msra.mxu1 %v1273_v47  ;;  %v1025_v51 = vcombine.high %v968_v41, %v984_v42  ;;  %v649_v6 = vand.u32 127, %v646_v26 }
 0x24d   : > { %3513 = vmatprep.subr.bf16.mxu0 %v3842_v14  ;;  %v1057_v52 = vcombine.high %v1000_v44, %v1016_v45  ;;  %3531 = vmatprep.subr.bf16.mxu1 %v3842_v14  ;;  %v3853_v7 = vmov -1e+30  }
 0x24e   : > { %v1032_v53 = vrot.slane %v1024_v49, %v4053_v43  ;;  %v1064_v54 = vrot.slane %v1056_v50, %v4053_v43  ;;  %v1039_v55 = vrot.slane %v1025_v51, %v4053_v43  ;;  %vm650_vm6 = vcmp.le.s32.totalorder %v649_v6, %v4047_v31 }
 0x24f   : > { %v1071_v56 = vrot.slane %v1057_v52, %v4053_v43  ;;  %v4111_v8 = vsel %vm650_vm6, 0.0, %v3853_v7 }
 0x250   : > { %v1088_v57 = vcombine.low %v1032_v53, %v1064_v54  ;;  %v1089_v0 = vcombine.high %v1032_v53, %v1064_v54 }
 0x251   : > { %v1090_v59 = vcombine.low %v1039_v55, %v1071_v56  ;;  %v1091_v4 = vcombine.high %v1039_v55, %v1071_v56 }
 0x252   : > { %v1164_v60 = vpack.c.bf16 %v1088_v57, %v1088_v57  ;;  %v1165_v2 = vpack.c.bf16 %v1089_v0, %v1089_v0 }
 0x253   : > { %v1166_v61 = vpack.c.bf16 %v1090_v59, %v1090_v59  ;;  %v1167_v5 = vpack.c.bf16 %v1091_v4, %v1091_v4 }
 0x254   : > { %3510 = vmatmul.mubr.msk.bf16.vlgmr.msra.gmra.mxu0 %vm1176_vm5, %v1164_v60 }
 0x255   : > { %3522 = vmatmul.mubr.msk.bf16.vlgmr.msra.gmra.mxu1 %vm1176_vm5, %v1166_v61  ;;  %3514 = vmatpush3.bf16.xpose.msra.mxu0 %v1227_v62 }
 0x256   : > { %3515 = vmatprep.mubr.msk.bf16.mxu0 %vm3843_vm3, %v3842_v14  ;;  %3525 = vmatprep.subr.bf16.mxu0 %v3842_v14 }
 0x257   : > { %3533 = vmatprep.mubr.msk.bf16.mxu1 %vm3843_vm3, %v3842_v14 }
 0x25c   : > { %3516 = vmatmul.mubr.msk.bf16.vlgmr.msra.gmra.mxu0 %vm1176_vm5, %v1165_v2 }
 0x25d   : > { %3526 = vmatpush3.bf16.xpose.msra.mxu0 %v1319_v3  ;;  %3527 = vmatprep.mubr.msk.bf16.mxu0 %vm3843_vm3, %v3842_v14 }
 0x25e   : > { %3537 = vmatprep.subr.bf16.mxu0 %v3842_v14 }
 0x264   : > { %3528 = vmatmul.mubr.msk.bf16.vlgmr.msra.gmra.mxu0 %vm1176_vm5, %v1167_v5 }
 0x265   : > { %3539 = vmatprep.mubr.msk.bf16.mxu0 %vm3843_vm3, %v3842_v14 }
 0x314   : > { %v1217_v9 = vpop.f32.mrf.mxu0 }
 0x315   : > { %v1218_v10 = vadd.f32 %v1217_v9, %v4111_v8  ;;  %v1309_v11 = vpop.f32.mrf.mxu1 }
 0x316   : > { %v3511_v12 = vpop.f32.mrf.mxu0  ;;  %v1310_v23 = vadd.f32 %v1309_v11, %v4111_v8 }
 0x317   : > { %v3523_v13 = vpop.f32.mrf.mxu1  ;;  %v1361_v15 = vsel %vm1176_vm5, %v1218_v10, -inf }
 0x318   : > { %1362 = vmax.xlane.f32.xlu1 %v1361_v15  ;;  %v1220_v16 = vpop.f32.mrf.mxu0  ;;  %v1367_v29 = vsel %vm1176_vm5, %v1310_v23, -inf }
 0x319   : > { %v1312_v17 = vpop.f32.mrf.mxu1 }
 0x31a   : > { %v3512_v18 = vpop.f32.mrf.mxu0 }
 0x31b   : > { %v3524_v19 = vpop.f32.mrf.mxu1 }
 0x31c   : > { %v1263_v20 = vpop.f32.mrf.mxu0 }
 0x31d   : > { %v1264_v26 = vadd.f32 %v1263_v20, %v4111_v8 }
 0x31e   : > { %v3517_v22 = vpop.f32.mrf.mxu0 }
 0x31f   : > { %v1364_v25 = vsel %vm1176_vm5, %v1264_v26, -inf }
 0x320   : > { %1365 = vmax.xlane.f32.xlu0 %v1364_v25  ;;  %v1266_v27 = vpop.f32.mrf.mxu0 }
 0x322   : > { %v3518_v28 = vpop.f32.mrf.mxu0 }
 0x324   : > { %1368 = vmax.xlane.f32.xlu0 %v1367_v29  ;;  %v1355_v30 = vpop.f32.mrf.mxu0 }
 0x325   : > { %v1356_v32 = vadd.f32 %v1355_v30, %v4111_v8 }
 0x326   : > { %v3529_v33 = vpop.f32.mrf.mxu0 }
 0x327   : > { %v1370_v34 = vsel %vm1176_vm5, %v1356_v32, -inf }
 0x328   : > { %1371 = vmax.xlane.f32.xlu1 %v1370_v34  ;;  %v1358_v35 = vpop.f32.mrf.mxu0 }
 0x32a   : > { %v3530_v37 = vpop.f32.mrf.mxu0 }
 0x339   : > { %747 = vrot.lane.b32.xlu1 %v4028_v21, %s3854_s16 }
 0x33a   : > { %744 = vrot.lane.b32.xlu0 %v4028_v21, %s3855_s27 }
 0x33d   : > { %750 = vrot.lane.b32.xlu1 %v4028_v21, %s3856_s15 }
 0x33e   : > { %753 = vrot.lane.b32.xlu0 %v4028_v21, %s3857_s19 }
 0x341   : > { %1760 = vrot.lane.b32.xlu1 %v4034_v24, %s3847_s30 }
 0x342   : > { %1757 = vrot.lane.b32.xlu0 %v4034_v24, %s3845_s3 }
 0x345   : > { %1763 = vrot.lane.b32.xlu1 %v4034_v24, %s3844_s25  ;;  %s3860_s25 = smov 24  }
 0x346   : > { %1766 = vrot.lane.b32.xlu0 %v4034_v24, %s3846_s12 }
 0x349   : > { %1748 = vrot.lane.b32.xlu1 %v4034_v24, %s3849_s29 }
 0x3a1   : > { %v1363_v38 = vpop.xlane.xlu1 %1362 }
 0x3a2   : > { %v1373_v39 = vsub.f32 %v1218_v10, %v1363_v38 }
 0x3a4   : > { %v1377_v40 = vmul.f32 1.442695, %v1373_v39 }
 0x3a6   : > { %3736 = vpow2.f32 %v1377_v40 }
 0x3a9   : > { %v1366_v21 = vpop.xlane.xlu0 %1365 }
 0x3aa   : > { %v1374_v41 = vsub.f32 %v1264_v26, %v1366_v21 }
 0x3ac   : > { %v1379_v46 = vmul.f32 1.442695, %v1374_v41 }
 0x3ad   : > { %v1369_v42 = vpop.xlane.xlu0 %1368 }
 0x3ae   : > { %v1375_v44 = vsub.f32 %v1310_v23, %v1369_v42 }
 0x3b0   : > { %v1381_v45 = vmul.f32 1.442695, %v1375_v44 }
 0x3b1   : > { %v745_v47 = vpop.permute.xlu0 %744  ;;  %v1372_v48 = vpop.xlane.xlu1 %1371 }
 0x3b2   : > { %3738 = vpow2.f32 %v1381_v45  ;;  %v1376_v49 = vsub.f32 %v1356_v32, %v1372_v48 }
 0x3b3   : > { %v4139_v50 = vpop.eup %3736  ;;  %3740 = vpow2.f32 %v1379_v46 }
 0x3b4   : > { %v1383_v51 = vmul.f32 1.442695, %v1376_v49  ;;  %v1385_v52 = vsel %vm1176_vm5, %v4139_v50, 0.0 }
 0x3b5   : > { %1386 = vadd.xlane.f32.xlu0 %v1385_v52  ;;  %v754_v53 = vpop.permute.xlu0 %753  ;;  %v748_v54 = vpop.permute.xlu1 %747 }
 0x3b6   : > { %3742 = vpow2.f32 %v1383_v51  ;;  %v908_v55 = vcombine.low %v748_v54, %v754_v53  ;;  %v909_v56 = vcombine.high %v748_v54, %v754_v53 }
 0x3b8   : > { %v916_v60 = vrot.slane %v908_v55, %v4050_v36  ;;  %v923_v61 = vrot.slane %v909_v56, %v4050_v36 }
 0x3b9   : > { %v751_v57 = vpop.permute.xlu1 %750  ;;  %v1758_v45 = vpop.permute.xlu0 %1757 }
 0x3ba   : > { %v892_v58 = vcombine.low %v745_v47, %v751_v57  ;;  %v893_v59 = vcombine.high %v745_v47, %v751_v57 }
 0x3bc   : > { %v900_v62 = vrot.slane %v892_v58, %v4050_v36  ;;  %v907_v63 = vrot.slane %v893_v59, %v4050_v36 }
 0x3bd   : > { %v1761_v44 = vpop.permute.xlu1 %1760  ;;  %v1767_v47 = vpop.permute.xlu0 %1766 }
 0x3be   : > { %v924_v0 = vcombine.low %v900_v62, %v916_v60  ;;  %v925_v1 = vcombine.high %v900_v62, %v916_v60  ;;  %v940_v2 = vcombine.low %v907_v63, %v923_v61  ;;  %v941_v3 = vcombine.high %v907_v63, %v923_v61 }
 0x3bf   : > { %v4147_v4 = vpop.eup %3738  ;;  %v1829_v51 = vcombine.low %v1761_v44, %v1767_v47  ;;  %v1830_v52 = vcombine.high %v1761_v44, %v1767_v47 }
 0x3c0   : > { %v932_v5 = vrot.slane %v924_v0, %v4053_v43  ;;  %v939_v6 = vrot.slane %v925_v1, %v4053_v43  ;;  %v948_v7 = vrot.slane %v940_v2, %v4053_v43  ;;  %v955_v9 = vrot.slane %v941_v3, %v4053_v43  ;;  %v4155_v11 = vpop.eup %3740 }
 0x3c1   : > { %v1391_v10 = vsel %vm1176_vm5, %v4147_v4, 0.0  ;;  %v1388_v22 = vsel %vm1176_vm5, %v4155_v11, 0.0  ;;  %v1764_v46 = vpop.permute.xlu1 %1763  ;;  %v1837_v55 = vrot.slane %v1829_v51, %v4050_v36  ;;  %v1844_v56 = vrot.slane %v1830_v52, %v4050_v36 }
 0x3c2   : > { %v1096_v12 = vcombine.low %v932_v5, %v939_v6  ;;  %v3369_v13 = vcombine.high %v932_v5, %v939_v6  ;;  %v1112_v15 = vcombine.low %v948_v7, %v955_v9  ;;  %v3370_v16 = vcombine.high %v948_v7, %v955_v9  ;;  %1392 = vadd.xlane.f32.xlu1 %v1391_v10 }
 0x3c3   : > { %v4157_v17 = vpop.eup %3742  ;;  %v1813_v48 = vcombine.low %v1758_v45, %v1764_v46  ;;  %v1814_v49 = vcombine.high %v1758_v45, %v1764_v46 }
 0x3c4   : > { %v1103_v18 = vrot.slane %v1096_v12, %v4050_v36  ;;  %v1111_v19 = vrot.slane %v3369_v13, %v4050_v36  ;;  %v1119_v20 = vrot.slane %v1112_v15, %v4050_v36  ;;  %v1127_v26 = vrot.slane %v3370_v16, %v4050_v36 }
 0x3c5   : > { %v1394_v23 = vsel %vm1176_vm5, %v4157_v17, 0.0  ;;  %v1821_v53 = vrot.slane %v1813_v48, %v4050_v36  ;;  %v1828_v54 = vrot.slane %v1814_v49, %v4050_v36  ;;  %v1749_v7 = vpop.permute.xlu1 %1748 }
 0x3c6   : > { %1389 = vadd.xlane.f32.xlu1 %v1388_v22  ;;  %1395 = vadd.xlane.f32.xlu0 %v1394_v23  ;;  %v1128_v25 = vcombine.low %v1103_v18, %v1111_v19  ;;  %v1144_v27 = vcombine.low %v1119_v20, %v1127_v26  ;;  %v1129_v28 = vcombine.high %v1103_v18, %v1111_v19 }
 0x3c7   : > { %v1145_v33 = vcombine.high %v1119_v20, %v1127_v26  ;;  %v1877_v57 = vcombine.low %v1821_v53, %v1837_v55  ;;  %v1878_v59 = vcombine.high %v1821_v53, %v1837_v55  ;;  %v1893_v60 = vcombine.low %v1828_v54, %v1844_v56 }
 0x3c8   : > { %v1136_v29 = vrot.slane %v1128_v25, %v4053_v43  ;;  %v1152_v30 = vrot.slane %v1144_v27, %v4053_v43  ;;  %v1143_v32 = vrot.slane %v1129_v28, %v4053_v43  ;;  %v1894_v61 = vcombine.high %v1828_v54, %v1844_v56 }
 0x3c9   : > { %v1159_v37 = vrot.slane %v1145_v33, %v4053_v43  ;;  %v1885_v62 = vrot.slane %v1877_v57, %v4053_v43  ;;  %v1892_v63 = vrot.slane %v1878_v59, %v4053_v43  ;;  %v1901_v0 = vrot.slane %v1893_v60, %v4053_v43 }
 0x3ca   : > { %v1160_v34 = vcombine.low %v1136_v29, %v1152_v30  ;;  %v1161_v35 = vcombine.high %v1136_v29, %v1152_v30  ;;  %v1908_v1 = vrot.slane %v1894_v61, %v4053_v43 }
 0x3cb   : > { %v1162_v40 = vcombine.low %v1143_v32, %v1159_v37  ;;  %v4171_v21 = vcombine.high %v1143_v32, %v1159_v37  ;;  %v3382_v2 = vcombine.low %v1885_v62, %v1892_v63  ;;  %v3384_v3 = vcombine.high %v1885_v62, %v1892_v63 }
 0x3cc   : > { %v1172_v38 = vpack.c.bf16 %v1160_v34, %v1160_v34  ;;  %v1173_v39 = vpack.c.bf16 %v1161_v35, %v1161_v35  ;;  %v3386_v5 = vcombine.low %v1901_v0, %v1908_v1  ;;  %v3388_v6 = vcombine.high %v1901_v0, %v1908_v1 }
 0x3cd   : > { %v2000_v9 = vrot.slane %v3382_v2, %v4050_v36  ;;  %v2016_v10 = vrot.slane %v3384_v3, %v4050_v36  ;;  %v1174_v19 = vpack.c.bf16 %v1162_v40, %v1162_v40 }
 0x3ce   : > { %v1414_v41 = vsel %vm1412_vm7, %v1172_v38, 0  ;;  %v1460_v42 = vsel %vm1412_vm7, %v1173_v39, 0  ;;  %v2032_v12 = vrot.slane %v3386_v5, %v4050_v36  ;;  %v2048_v13 = vrot.slane %v3388_v6, %v4050_v36 }
 0x3cf   : > { %3532 = vmatpush3.bf16.msra.mxu1 %v1414_v41  ;;  %3538 = vmatpush3.bf16.msra.mxu0 %v1460_v42  ;;  %v2065_v23 = vcombine.low %v2000_v9, %v2016_v10  ;;  %v1506_v27 = vsel %vm1412_vm7, %v1174_v19, 0  ;;  %v2066_v42 = vcombine.high %v2000_v9, %v2016_v10 }
 0x3d0   : > { %3543 = vmatprep.subr.bf16.mxu1 %v3842_v14  ;;  %3549 = vmatprep.subr.bf16.mxu0 %v3842_v14  ;;  %v2097_v25 = vcombine.low %v2032_v12, %v2048_v13  ;;  %v2098_v44 = vcombine.high %v2032_v12, %v2048_v13 }
 0x3d1   : > { %v2080_v57 = vrot.slane %v2066_v42, %v4053_v43 }
 0x3d2   : > { %v2105_v30 = vrot.slane %v2097_v25, %v4053_v43 }
 0x3d7   : > { %1754 = vrot.lane.b32.xlu1 %v4034_v24, %s3850_s13 }
 0x3dc   : > { %1751 = vrot.lane.b32.xlu0 %v4034_v24, %s3848_s20 }
 0x43e   : > { %v1387_v58 = vpop.xlane.xlu0 %1386 }
 0x43f   : > { %3744 = vrcp.f32 %v1387_v58  ;;  %v2112_v58 = vrot.slane %v2098_v44, %v4053_v43 }
 0x441   : > { %v2119_v12 = vcombine.low %v2080_v57, %v2112_v58 }
 0x44b   : > { %v1393_v15 = vpop.xlane.xlu1 %1392 }
 0x44c   : > { %v3745_v16 = vpop.eup %3744  ;;  %3746 = vrcp.f32 %v1393_v15 }
 0x44d   : > { %v1401_v18 = vmul.f32 %v3745_v16, %v4139_v50  ;;  %v2073_v50 = vrot.slane %v2065_v23, %v4053_v43 }
 0x44f   : > { %v1396_v20 = vpop.xlane.xlu0 %1395  ;;  %v1390_v26 = vpop.xlane.xlu1 %1389  ;;  %v1405_v22 = vpack.c.bf16 %v1401_v18, %v1401_v18  ;;  %v2117_v41 = vcombine.low %v2073_v50, %v2105_v30 }
 0x450   : > { %3748 = vrcp.f32 %v1390_v26 }
 0x451   : > { %3534 = vmatmul.mubr.msk.bf16.vlgmr.msra.gmra.mxu1 %vm1176_vm5, %v1405_v22  ;;  %3750 = vrcp.f32 %v1396_v20  ;;  %v2193_v56 = vpack.c.bf16 %v2117_v41, %v2117_v41  ;;  %v2118_v20 = vcombine.high %v2073_v50, %v2105_v30  ;;  %v2195_v22 = vpack.c.bf16 %v2119_v12, %v2119_v12 }
 0x452   : > { %3544 = vmatpush3.bf16.msra.mxu1 %v1506_v27  ;;  %3545 = vmatprep.mubr.msk.bf16.mxu1 %vm3843_vm3, %v3842_v14 }
 0x453   : > { %v1752_v28 = vpop.permute.xlu0 %1751  ;;  %v1755_v29 = vpop.permute.xlu1 %1754  ;;  %3555 = vmatprep.subr.bf16.mxu1 %v3842_v14  ;;  %v2297_v50 = vsel %vm1176_vm5, %v2195_v22, 0 }
 0x454   : > { %v1781_v32 = vcombine.low %v4034_v24, %v1752_v28  ;;  %v1782_v33 = vcombine.high %v4034_v24, %v1752_v28  ;;  %v1797_v34 = vcombine.low %v1749_v7, %v1755_v29  ;;  %v1798_v35 = vcombine.high %v1749_v7, %v1755_v29 }
 0x455   : > { %v1175_v7 = vpack.c.bf16 %v4171_v21, %v4171_v21  ;;  %v2194_v29 = vpack.c.bf16 %v2118_v20, %v2118_v20 }
 0x456   : > { %v1789_v37 = vrot.slane %v1781_v32, %v4050_v36  ;;  %v1796_v38 = vrot.slane %v1782_v33, %v4050_v36  ;;  %v1805_v39 = vrot.slane %v1797_v34, %v4050_v36  ;;  %v1812_v40 = vrot.slane %v1798_v35, %v4050_v36 }
 0x457   : > { %v1552_v21 = vsel %vm1412_vm7, %v1175_v7, 0  ;;  %v2120_v33 = vcombine.high %v2080_v57, %v2112_v58 }
 0x458   : > { %v1845_v45 = vcombine.low %v1789_v37, %v1805_v39  ;;  %v1846_v46 = vcombine.high %v1789_v37, %v1805_v39  ;;  %v1861_v47 = vcombine.low %v1796_v38, %v1812_v40  ;;  %v1862_v48 = vcombine.high %v1796_v38, %v1812_v40 }
 0x459   : > { %v3747_v49 = vpop.eup %3746  ;;  %v2196_v37 = vpack.c.bf16 %v2120_v33, %v2120_v33 }
 0x45a   : > { %v1853_v51 = vrot.slane %v1845_v45, %v4053_v43  ;;  %v1860_v52 = vrot.slane %v1846_v46, %v4053_v43  ;;  %v1869_v53 = vrot.slane %v1861_v47, %v4053_v43  ;;  %v1876_v54 = vrot.slane %v1862_v48, %v4053_v43 }
 0x45b   : > { %v1403_v55 = vmul.f32 %v3747_v49, %v4147_v4  ;;  %v2205_v4 = vsel %vm1176_vm5, %v2193_v56, 0  ;;  %v2343_v39 = vsel %vm1176_vm5, %v2196_v37, 0 }
 0x45c   : > { %v3381_v59 = vcombine.low %v1853_v51, %v1860_v52  ;;  %v3383_v60 = vcombine.high %v1853_v51, %v1860_v52  ;;  %v3385_v61 = vcombine.low %v1869_v53, %v1876_v54  ;;  %v3387_v62 = vcombine.high %v1869_v53, %v1876_v54 }
 0x45d   : > { %v1407_v63 = vpack.c.bf16 %v1403_v55, %v1403_v55  ;;  %v3749_v0 = vpop.eup %3748 }
 0x45e   : > { %v1993_v1 = vrot.slane %v3381_v59, %v4050_v36  ;;  %v2009_v2 = vrot.slane %v3383_v60, %v4050_v36  ;;  %v2025_v3 = vrot.slane %v3385_v61, %v4050_v36  ;;  %v2041_v5 = vrot.slane %v3387_v62, %v4050_v36  ;;  %v3751_v15 = vpop.eup %3750 }
 0x45f   : > { %3546 = vmatmul.mubr.msk.bf16.vlgmr.msra.gmra.mxu1 %vm1176_vm5, %v1407_v63  ;;  %v1402_v6 = vmul.f32 %v3749_v0, %v4155_v11  ;;  %v1404_v23 = vmul.f32 %v3751_v15, %v4157_v17  ;;  %v2251_v17 = vsel %vm1176_vm5, %v2194_v29, 0 }
 0x460   : > { %v2049_v9 = vcombine.low %v1993_v1, %v2009_v2  ;;  %v2081_v10 = vcombine.low %v2025_v3, %v2041_v5  ;;  %3556 = vmatpush3.bf16.xpose.msra.mxu1 %v2205_v4  ;;  %3557 = vmatprep.mubr.msk.bf16.mxu1 %vm3843_vm3, %v3842_v14  ;;  %v2050_v16 = vcombine.high %v1993_v1, %v2009_v2 }
 0x461   : > { %v1406_v13 = vpack.c.bf16 %v1402_v6, %v1402_v6  ;;  %3567 = vmatprep.subr.bf16.mxu1 %v3842_v14  ;;  %v2082_v18 = vcombine.high %v2025_v3, %v2041_v5  ;;  %v1408_v30 = vpack.c.bf16 %v1404_v23, %v1404_v23 }
 0x462   : > { %v2057_v19 = vrot.slane %v2049_v9, %v4053_v43  ;;  %v2089_v11 = vrot.slane %v2081_v10, %v4053_v43  ;;  %v2064_v27 = vrot.slane %v2050_v16, %v4053_v43 }
 0x463   : > { %3540 = vmatmul.mubr.msk.bf16.vlgmr.msra.gmra.mxu0 %vm1176_vm5, %v1406_v13  ;;  %v2096_v28 = vrot.slane %v2082_v18, %v4053_v43 }
 0x464   : > { %3550 = vmatpush3.bf16.msra.mxu0 %v1552_v21  ;;  %v2113_v26 = vcombine.low %v2057_v19, %v2089_v11  ;;  %3551 = vmatprep.mubr.msk.bf16.mxu0 %vm3843_vm3, %v3842_v14  ;;  %v2114_v34 = vcombine.high %v2057_v19, %v2089_v11 }
 0x465   : > { %3561 = vmatprep.subr.bf16.mxu0 %v3842_v14  ;;  %v2115_v32 = vcombine.low %v2064_v27, %v2096_v28  ;;  %v2116_v40 = vcombine.high %v2064_v27, %v2096_v28 }
 0x466   : > { %v2189_v25 = vpack.c.bf16 %v2113_v26, %v2113_v26  ;;  %v2190_v38 = vpack.c.bf16 %v2114_v34, %v2114_v34 }
 0x467   : > { %v2191_v35 = vpack.c.bf16 %v2115_v32, %v2115_v32  ;;  %v2192_v41 = vpack.c.bf16 %v2116_v40, %v2116_v40 }
 0x468   : > { %3558 = vmatmul.mubr.msk.bf16.vlgmr.msra.gmra.mxu1 %vm1176_vm5, %v2189_v25 }
 0x469   : > { %3568 = vmatpush3.bf16.xpose.msra.mxu1 %v2297_v50  ;;  %3569 = vmatprep.mubr.msk.bf16.mxu1 %vm3843_vm3, %v3842_v14 }
 0x46a   : > { %3579 = vmatprep.subr.bf16.mxu1 %v3842_v14 }
 0x46b   : > { %3552 = vmatmul.mubr.msk.bf16.vlgmr.msra.gmra.mxu0 %vm1176_vm5, %v1408_v30 }
 0x46c   : > { %3562 = vmatpush3.bf16.xpose.msra.mxu0 %v2251_v17  ;;  %3563 = vmatprep.mubr.msk.bf16.mxu0 %vm3843_vm3, %v3842_v14 }
 0x46d   : > { %3573 = vmatprep.subr.bf16.mxu0 %v3842_v14 }
 0x470   : > { %3570 = vmatmul.mubr.msk.bf16.vlgmr.msra.gmra.mxu1 %vm1176_vm5, %v2191_v35 }
 0x471   : > { %3581 = vmatprep.mubr.msk.bf16.mxu1 %vm3843_vm3, %v3842_v14 }
 0x473   : > { %3564 = vmatmul.mubr.msk.bf16.vlgmr.msra.gmra.mxu0 %vm1176_vm5, %v2190_v38 }
 0x474   : > { %3574 = vmatpush3.bf16.xpose.msra.mxu0 %v2343_v39  ;;  %3575 = vmatprep.mubr.msk.bf16.mxu0 %vm3843_vm3, %v3842_v14 }
 0x475   : > { %3585 = vmatprep.subr.bf16.mxu0 %v3842_v14 }
 0x47b   : > { %3576 = vmatmul.mubr.msk.bf16.vlgmr.msra.gmra.mxu0 %vm1176_vm5, %v2192_v41 }
 0x47c   : > { %3587 = vmatprep.mubr.msk.bf16.mxu0 %vm3843_vm3, %v3842_v14 }
 0x511   : > { %v1450_v42 = vpop.f32.mrf.mxu1 }
 0x513   : > { %v3535_v44 = vpop.f32.mrf.mxu1 }
 0x515   : > { %v1453_v45 = vpop.f32.mrf.mxu1 }
 0x517   : > { %v3536_v46 = vpop.f32.mrf.mxu1 }
 0x51f   : > { %v1542_v47 = vpop.f32.mrf.mxu1 }
 0x520   : > { %v1594_v48 = vcombine.low %v1450_v42, %v1542_v47  ;;  %v1595_v49 = vcombine.high %v1450_v42, %v1542_v47 }
 0x521   : > { %v3547_v51 = vpop.f32.mrf.mxu1 }
 0x522   : > { %v1602_v3 = vrot.slane %v1594_v48, %v4050_v36  ;;  %v1609_v5 = vrot.slane %v1595_v49, %v4050_v36 }
 0x523   : > { %v1496_v52 = vpop.f32.mrf.mxu0  ;;  %v1545_v53 = vpop.f32.mrf.mxu1 }
 0x525   : > { %v3541_v54 = vpop.f32.mrf.mxu0  ;;  %v3548_v55 = vpop.f32.mrf.mxu1 }
 0x527   : > { %v1499_v56 = vpop.f32.mrf.mxu0 }
 0x528   : > { %v2241_v57 = vpop.f32.mrf.mxu1 }
 0x529   : > { %v3542_v58 = vpop.f32.mrf.mxu0  ;;  %v4258_v59 = vadd.f32 %v2241_v57, %v4111_v8 }
 0x52a   : > { %v3559_v60 = vpop.f32.mrf.mxu1 }
 0x52b   : > { %v1588_v61 = vpop.f32.mrf.mxu0  ;;  %v2385_v62 = vsel %vm1176_vm5, %v4258_v59, -inf }
 0x52c   : > { %v1610_v63 = vcombine.low %v1496_v52, %v1588_v61  ;;  %v1611_v0 = vcombine.high %v1496_v52, %v1588_v61  ;;  %2386 = vmax.xlane.f32.xlu0 %v2385_v62  ;;  %v2244_v1 = vpop.f32.mrf.mxu1 }
 0x52d   : > { %v3553_v2 = vpop.f32.mrf.mxu0 }
 0x52e   : > { %v1618_v4 = vrot.slane %v1610_v63, %v4050_v36  ;;  %v1625_v6 = vrot.slane %v1611_v0, %v4050_v36  ;;  %v3560_v7 = vpop.f32.mrf.mxu1 }
 0x52f   : > { %v1591_v9 = vpop.f32.mrf.mxu0 }
 0x530   : > { %v1626_v10 = vcombine.low %v1602_v3, %v1618_v4  ;;  %v1627_v12 = vcombine.high %v1602_v3, %v1618_v4  ;;  %v1642_v13 = vcombine.low %v1609_v5, %v1625_v6  ;;  %v1643_v15 = vcombine.high %v1609_v5, %v1625_v6  ;;  %v2333_v16 = vpop.f32.mrf.mxu1 }
 0x531   : > { %v3554_v18 = vpop.f32.mrf.mxu0  ;;  %v4267_v19 = vadd.f32 %v2333_v16, %v4111_v8 }
 0x532   : > { %v1634_v11 = vrot.slane %v1626_v10, %v4053_v43  ;;  %v1641_v21 = vrot.slane %v1627_v12, %v4053_v43  ;;  %v1650_v20 = vrot.slane %v1642_v13, %v4053_v43  ;;  %v1657_v26 = vrot.slane %v1643_v15, %v4053_v43  ;;  %v3571_v22 = vpop.f32.mrf.mxu1 }
 0x533   : > { %v2287_v23 = vpop.f32.mrf.mxu0  ;;  %v2391_v25 = vsel %vm1176_vm5, %v4267_v19, -inf }
 0x534   : > { %v1662_v27 = vcombine.low %v1634_v11, %v1641_v21  ;;  %v3379_v28 = vcombine.high %v1634_v11, %v1641_v21  ;;  %v1678_v29 = vcombine.low %v1650_v20, %v1657_v26  ;;  %v3380_v50 = vcombine.high %v1650_v20, %v1657_v26  ;;  %2392 = vmax.xlane.f32.xlu0 %v2391_v25  ;;  %v2336_v30 = vpop.f32.mrf.mxu1 }
 0x535   : > { %v2288_v32 = vadd.f32 %v2287_v23, %v4111_v8  ;;  %v3565_v17 = vpop.f32.mrf.mxu0 }
 0x536   : > { %v1669_v33 = vrot.slane %v1662_v27, %v4050_v36  ;;  %v1677_v34 = vrot.slane %v3379_v28, %v4050_v36  ;;  %v1685_v35 = vrot.slane %v1678_v29, %v4050_v36  ;;  %v1693_v37 = vrot.slane %v3380_v50, %v4050_v36  ;;  %v3572_v38 = vpop.f32.mrf.mxu1 }
 0x537   : > { %v2388_v39 = vsel %vm1176_vm5, %v2288_v32, -inf  ;;  %v2290_v40 = vpop.f32.mrf.mxu0 }
 0x538   : > { %2389 = vmax.xlane.f32.xlu1 %v2388_v39  ;;  %v1695_v41 = vcombine.high %v1669_v33, %v1677_v34  ;;  %v1711_v42 = vcombine.high %v1685_v35, %v1693_v37  ;;  %v1694_v44 = vcombine.low %v1669_v33, %v1677_v34  ;;  %v1710_v45 = vcombine.low %v1685_v35, %v1693_v37 }
 0x539   : > { %v3566_v46 = vpop.f32.mrf.mxu0 }
 0x53a   : > { %v4282_v47 = vrot.slane %v1695_v41, %v4053_v43  ;;  %v4285_v48 = vrot.slane %v1711_v42, %v4053_v43  ;;  %v4288_v49 = vrot.slane %v1694_v44, %v4053_v43  ;;  %v4291_v51 = vrot.slane %v1710_v45, %v4053_v43 }
 0x53b   : > { %v2379_v52 = vpop.f32.mrf.mxu0 }
 0x53c   : > { %v2380_v53 = vadd.f32 %v2379_v52, %v4111_v8  ;;  %v1728_v54 = vcombine.low %v4282_v47, %v4285_v48  ;;  %v1726_v55 = vcombine.low %v4288_v49, %v4291_v51  ;;  %v1727_v56 = vcombine.high %v4288_v49, %v4291_v51  ;;  %v4409_v51 = vld [vmem:[%s3989_s17] sm:$0x3f] }
 0x53d   : > { %v3577_v57 = vpop.f32.mrf.mxu0  ;;  %v1729_v58 = vcombine.high %v4282_v47, %v4285_v48  ;;  %v2775_v49 = vsub.s32 0, %v4047_v31 }
 0x53e   : > { %v2394_v60 = vsel %vm1176_vm5, %v2380_v53, -inf }
 0x53f   : > { %2395 = vmax.xlane.f32.xlu0 %v2394_v60  ;;  %v2382_v61 = vpop.f32.mrf.mxu0 }
 0x541   : > { %v3578_v62 = vpop.f32.mrf.mxu0 }
 0x549   : > { %1769 = vrot.lane.b32.xlu1 %v4034_v24, %s3855_s27 }
 0x5b5   : > { %v2387_v8 = vpop.xlane.xlu0 %2386 }
 0x5b6   : > { %v2397_v63 = vsub.f32 %v4258_v59, %v2387_v8 }
 0x5b8   : > { %v2401_v0 = vmul.f32 1.442695, %v2397_v63 }
 0x5ba   : > { %3752 = vpow2.f32 %v2401_v0 }
 0x5bd   : > { %v2393_v59 = vpop.xlane.xlu0 %2392 }
 0x5be   : > { %v2399_v13 = vsub.f32 %v4267_v19, %v2393_v59 }
 0x5c0   : > { %v2405_v15 = vmul.f32 1.442695, %v2399_v13 }
 0x5c1   : > { %v2390_v1 = vpop.xlane.xlu1 %2389 }
 0x5c2   : > { %v2398_v2 = vsub.f32 %v2288_v32, %v2390_v1 }
 0x5c4   : > { %v2403_v3 = vmul.f32 1.442695, %v2398_v2 }
 0x5c5   : > { %v1770_v20 = vpop.permute.xlu1 %1769 }
 0x5c6   : > { %3754 = vpow2.f32 %v2403_v3 }
 0x5c7   : > { %v4306_v5 = vpop.eup %3752 }
 0x5c8   : > { %v2409_v4 = vsel %vm1176_vm5, %v4306_v5, 0.0  ;;  %v2396_v9 = vpop.xlane.xlu0 %2395 }
 0x5c9   : > { %2410 = vadd.xlane.f32.xlu1 %v2409_v4  ;;  %v2400_v10 = vsub.f32 %v2380_v53, %v2396_v9 }
 0x5cb   : > { %v2407_v12 = vmul.f32 1.442695, %v2400_v10 }
 0x5cd   : > { %3756 = vpow2.f32 %v2407_v12 }
 0x5ce   : > { %3758 = vpow2.f32 %v2405_v15 }
 0x5d3   : > { %v4310_v6 = vpop.eup %3754 }
 0x5d4   : > { %v2412_v7 = vsel %vm1176_vm5, %v4310_v6, 0.0 }
 0x5d5   : > { %2413 = vadd.xlane.f32.xlu0 %v2412_v7 }
 0x5da   : > { %1775 = vrot.lane.b32.xlu1 %v4034_v24, %s3856_s15  ;;  %v4321_v16 = vpop.eup %3756 }
 0x5db   : > { %v2418_v18 = vsel %vm1176_vm5, %v4321_v16, 0.0  ;;  %v4325_v11 = vpop.eup %3758 }
 0x5dc   : > { %v2415_v21 = vsel %vm1176_vm5, %v4325_v11, 0.0 }
 0x5de   : > { %1778 = vrot.lane.b32.xlu1 %v4034_v24, %s3857_s19 }
 0x5eb   : > { %1772 = vrot.lane.b32.xlu0 %v4034_v24, %s3854_s16 }
 0x602   : > { %2419 = vadd.xlane.f32.xlu1 %v2418_v18 }
 0x60a   : > { %2416 = vadd.xlane.f32.xlu0 %v2415_v21 }
 0x652   : > { %v2411_v24 = vpop.xlane.xlu1 %2410 }
 0x653   : > { %3760 = vrcp.f32 %v2411_v24 }
 0x656   : > { %v1776_v26 = vpop.permute.xlu1 %1775 }
 0x657   : > { %v1917_v19 = vcombine.low %v1770_v20, %v1776_v26  ;;  %v1918_v23 = vcombine.high %v1770_v20, %v1776_v26 }
 0x659   : > { %v1925_v50 = vrot.slane %v1917_v19, %v4050_v36  ;;  %v1932_v30 = vrot.slane %v1918_v23, %v4050_v36 }
 0x65a   : > { %v1779_v25 = vpop.permute.xlu1 %1778 }
 0x65e   : > { %v2414_v22 = vpop.xlane.xlu0 %2413 }
 0x65f   : > { %3762 = vrcp.f32 %v2414_v22 }
 0x660   : > { %v3761_v0 = vpop.eup %3760 }
 0x661   : > { %v2425_v18 = vmul.f32 %v3761_v0, %v4306_v5 }
 0x662   : > { %v1773_v27 = vpop.permute.xlu0 %1772 }
 0x663   : > { %v1933_v28 = vcombine.low %v1773_v27, %v1779_v25  ;;  %v1934_v29 = vcombine.high %v1773_v27, %v1779_v25  ;;  %v2429_v19 = vpack.c.bf16 %v2425_v18, %v2425_v18 }
 0x665   : > { %v1941_v32 = vrot.slane %v1933_v28, %v4050_v36  ;;  %v1948_v17 = vrot.slane %v1934_v29, %v4050_v36 }
 0x667   : > { %v1949_v33 = vcombine.low %v1925_v50, %v1941_v32  ;;  %v1950_v34 = vcombine.high %v1925_v50, %v1941_v32  ;;  %v1965_v35 = vcombine.low %v1932_v30, %v1948_v17  ;;  %v1966_v37 = vcombine.high %v1932_v30, %v1948_v17 }
 0x669   : > { %v1957_v38 = vrot.slane %v1949_v33, %v4053_v43  ;;  %v1964_v39 = vrot.slane %v1950_v34, %v4053_v43  ;;  %v1973_v40 = vrot.slane %v1965_v35, %v4053_v43  ;;  %v1980_v41 = vrot.slane %v1966_v37, %v4053_v43 }
 0x66b   : > { %v2121_v42 = vcombine.low %v1957_v38, %v1964_v39  ;;  %v3389_v44 = vcombine.high %v1957_v38, %v1964_v39  ;;  %v2137_v45 = vcombine.low %v1973_v40, %v1980_v41  ;;  %v3390_v46 = vcombine.high %v1973_v40, %v1980_v41 }
 0x66c   : > { %v3763_v7 = vpop.eup %3762 }
 0x66d   : > { %v2128_v52 = vrot.slane %v2121_v42, %v4050_v36  ;;  %v2136_v53 = vrot.slane %v3389_v44, %v4050_v36  ;;  %v2144_v57 = vrot.slane %v2137_v45, %v4050_v36  ;;  %v2152_v60 = vrot.slane %v3390_v46, %v4050_v36 }
 0x66e   : > { %v2426_v21 = vmul.f32 %v3763_v7, %v4310_v6 }
 0x66f   : > { %v2153_v61 = vcombine.low %v2128_v52, %v2136_v53  ;;  %v2169_v62 = vcombine.low %v2144_v57, %v2152_v60  ;;  %v2154_v8 = vcombine.high %v2128_v52, %v2136_v53  ;;  %v2170_v63 = vcombine.high %v2144_v57, %v2152_v60 }
 0x670   : > { %v2430_v23 = vpack.c.bf16 %v2426_v21, %v2426_v21 }
 0x671   : > { %v2161_v1 = vrot.slane %v2153_v61, %v4053_v43  ;;  %v2177_v2 = vrot.slane %v2169_v62, %v4053_v43  ;;  %v2168_v3 = vrot.slane %v2154_v8, %v4053_v43  ;;  %v2184_v4 = vrot.slane %v2170_v63, %v4053_v43 }
 0x673   : > { %v2185_v59 = vcombine.low %v2161_v1, %v2177_v2  ;;  %v2186_v9 = vcombine.high %v2161_v1, %v2177_v2  ;;  %v2187_v10 = vcombine.low %v2168_v3, %v2184_v4  ;;  %v2188_v12 = vcombine.high %v2168_v3, %v2184_v4 }
 0x675   : > { %v2197_v13 = vpack.c.bf16 %v2185_v59, %v2185_v59  ;;  %v2198_v15 = vpack.c.bf16 %v2186_v9, %v2186_v9  ;;  %v2199_v26 = vpack.c.bf16 %v2187_v10, %v2187_v10  ;;  %v2200_v22 = vpack.c.bf16 %v2188_v12, %v2188_v12 }
 0x677   : > { %v2437_v20 = vsel %vm1412_vm7, %v2197_v13, 0  ;;  %v2483_v24 = vsel %vm1412_vm7, %v2198_v15, 0  ;;  %v2529_v5 = vsel %vm1412_vm7, %v2199_v26, 0  ;;  %v2575_v6 = vsel %vm1412_vm7, %v2200_v22, 0 }
 0x678   : > { %3580 = vmatpush3.bf16.msra.mxu1 %v2437_v20  ;;  %3586 = vmatpush3.bf16.msra.mxu0 %v2483_v24  ;;  %v3724_v20 = vld [vmem:[%s3968_s18 + $0x8] sm:$0xff]  }
 0x679   : > { %3591 = vmatprep.subr.bf16.mxu1 %v3842_v14  ;;  %3597 = vmatprep.subr.bf16.mxu0 %v3842_v14 }
 0x67b   : > { %3582 = vmatmul.mubr.msk.bf16.vlgmr.msra.gmra.mxu1 %vm1176_vm5, %v2429_v19  ;;  %3588 = vmatmul.mubr.msk.bf16.vlgmr.msra.gmra.mxu0 %vm1176_vm5, %v2430_v23 }
 0x67c   : > { %3592 = vmatpush3.bf16.msra.mxu1 %v2529_v5  ;;  %3598 = vmatpush3.bf16.msra.mxu0 %v2575_v6 }
 0x67d   : > { %3599 = vmatprep.mubr.msk.bf16.mxu0 %vm3843_vm3, %v3842_v14  ;;  %3593 = vmatprep.mubr.msk.bf16.mxu1 %vm3843_vm3, %v3842_v14 }
 0x67e   : > { %3603 = vmatprep.subr.bf16.mxu1 %v3842_v14  ;;  %3611 = vmatprep.subr.bf16.mxu0 %v3842_v14 }
 0x68b   : > { %v2420_v25 = vpop.xlane.xlu1 %2419 }
 0x68c   : > { %3764 = vrcp.f32 %v2420_v25 }
 0x693   : > { %v2417_v27 = vpop.xlane.xlu0 %2416 }
 0x694   : > { %3766 = vrcp.f32 %v2417_v27  ;;  %v3725_v27 = vld [vmem:[%s3968_s18] sm:$0xff]   ;;  %s3858_s18 = smov 16  }
 0x699   : > { %v3765_v28 = vpop.eup %3764 }
 0x69a   : > { %v2428_v29 = vmul.f32 %v3765_v28, %v4321_v16 }
 0x69c   : > { %v2432_v50 = vpack.c.bf16 %v2428_v29, %v2428_v29 }
 0x69e   : > { %3600 = vmatmul.mubr.msk.bf16.vlgmr.msra.gmra.mxu0 %vm1176_vm5, %v2432_v50 }
 0x69f   : > { %3615 = vmatprep.mubr.msk.bf16.mxu0 %vm3843_vm3, %v3842_v14 }
 0x6a1   : > { %v3767_v30 = vpop.eup %3766 }
 0x6a2   : > { %v2427_v32 = vmul.f32 %v3767_v30, %v4325_v11 }
 0x6a4   : > { %v2431_v17 = vpack.c.bf16 %v2427_v32, %v2427_v32 }
 0x6a6   : > { %3594 = vmatmul.mubr.msk.bf16.vlgmr.msra.gmra.mxu1 %vm1176_vm5, %v2431_v17 }
 0x6a7   : > { %3607 = vmatprep.mubr.msk.bf16.mxu1 %vm3843_vm3, %v3842_v14  ;;  %3604 = vmatpush3.bf16.msra.mxu1 %v3724_v20  ;;  %v3726_v20 = vld [vmem:[%s3973_s24 + $0x8] sm:$0xff]  }
 0x6a8   : > { %3605 = vmatprep.subr.bf16.mxu1 %v3842_v14  ;;  %3612 = vmatpush3.bf16.msra.mxu0 %v3726_v20 }
 0x6a9   : > { %3613 = vmatprep.subr.bf16.mxu0 %v3842_v14 }
 0x6ab   : > { %3606 = vmatpush3.bf16.msra.mxu1 %v3725_v27 }
 0x6ac   : > { %3619 = vmatprep.subr.bf16.mxu1 %v3842_v14 }
 0x73b   : > { %v2473_v33 = vpop.f32.mrf.mxu1  ;;  %v2519_v34 = vpop.f32.mrf.mxu0 }
 0x73d   : > { %v3583_v35 = vpop.f32.mrf.mxu1  ;;  %v3589_v37 = vpop.f32.mrf.mxu0 }
 0x73f   : > { %v2476_v16 = vpop.f32.mrf.mxu1  ;;  %v2522_v38 = vpop.f32.mrf.mxu0 }
 0x741   : > { %v3584_v39 = vpop.f32.mrf.mxu1  ;;  %v3590_v40 = vpop.f32.mrf.mxu0 }
 0x75e   : > { %v2611_v41 = vpop.f32.mrf.mxu0 }
 0x75f   : > { %v2633_v46 = vcombine.low %v2519_v34, %v2611_v41  ;;  %v2634_v11 = vcombine.high %v2519_v34, %v2611_v41 }
 0x760   : > { %v3601_v42 = vpop.f32.mrf.mxu0 }
 0x761   : > { %v2641_v61 = vrot.slane %v2633_v46, %v4050_v36  ;;  %v2648_v62 = vrot.slane %v2634_v11, %v4050_v36 }
 0x762   : > { %v2614_v44 = vpop.f32.mrf.mxu0 }
 0x764   : > { %v3602_v45 = vpop.f32.mrf.mxu0 }
 0x766   : > { %v2565_v52 = vpop.f32.mrf.mxu1 }
 0x767   : > { %v2617_v53 = vcombine.low %v2473_v33, %v2565_v52  ;;  %v2618_v57 = vcombine.high %v2473_v33, %v2565_v52 }
 0x768   : > { %v3595_v60 = vpop.f32.mrf.mxu1 }
 0x769   : > { %v2625_v8 = vrot.slane %v2617_v53, %v4050_v36  ;;  %v2632_v63 = vrot.slane %v2618_v57, %v4050_v36  ;;  %v3776_v60 = vld [vmem:[#allocation2] sm:$0xff] }
 0x76a   : > { %v2568_v0 = vpop.f32.mrf.mxu1 }
 0x76b   : > { %v2649_v1 = vcombine.low %v2625_v8, %v2641_v61  ;;  %v2650_v2 = vcombine.high %v2625_v8, %v2641_v61  ;;  %v2665_v3 = vcombine.low %v2632_v63, %v2648_v62  ;;  %v2666_v4 = vcombine.high %v2632_v63, %v2648_v62 }
 0x76c   : > { %v3596_v7 = vpop.f32.mrf.mxu1 }
 0x76d   : > { %v2657_v59 = vrot.slane %v2649_v1, %v4053_v43  ;;  %v2664_v9 = vrot.slane %v2650_v2, %v4053_v43  ;;  %v2673_v10 = vrot.slane %v2665_v3, %v4053_v43  ;;  %v2680_v12 = vrot.slane %v2666_v4, %v4053_v43  ;;  %v3777_v1 = vld [vmem:[#allocation2 + $0x8] sm:$0xff] }
 0x76f   : > { %v2685_v13 = vcombine.low %v2657_v59, %v2664_v9  ;;  %v3399_v15 = vcombine.high %v2657_v59, %v2664_v9  ;;  %v2701_v18 = vcombine.low %v2673_v10, %v2680_v12  ;;  %v3400_v21 = vcombine.high %v2673_v10, %v2680_v12 }
 0x771   : > { %v2692_v24 = vrot.slane %v2685_v13, %v4050_v36  ;;  %v2700_v26 = vrot.slane %v3399_v15, %v4050_v36  ;;  %v2708_v22 = vrot.slane %v2701_v18, %v4050_v36  ;;  %v2716_v19 = vrot.slane %v3400_v21, %v4050_v36 }
 0x773   : > { %v2718_v23 = vcombine.high %v2692_v24, %v2700_v26  ;;  %v2734_v5 = vcombine.high %v2708_v22, %v2716_v19  ;;  %v2717_v6 = vcombine.low %v2692_v24, %v2700_v26  ;;  %v2733_v25 = vcombine.low %v2708_v22, %v2716_v19  ;;  %v3727_v24 = vld [vmem:[%s3973_s24] sm:$0xff]   ;;  %v3728_v26 = vld [vmem:[%s3984_s14 + $0x38] sm:$0xff]   ;;  %v3729_v22 = vld [vmem:[%s3984_s14 + $0x30] sm:$0xff]  }
 0x774   : > { %3614 = vmatpush3.bf16.msra.mxu0 %v3727_v24  ;;  %v3730_v19 = vld [vmem:[%s3984_s14 + $0x28] sm:$0xff]  }
 0x775   : > { %v2732_v28 = vrot.slane %v2718_v23, %v4053_v43  ;;  %v2748_v29 = vrot.slane %v2734_v5, %v4053_v43  ;;  %v2725_v50 = vrot.slane %v2717_v6, %v4053_v43  ;;  %v2741_v30 = vrot.slane %v2733_v25, %v4053_v43  ;;  %v3731_v23 = vld [vmem:[%s3984_s14 + $0x20] sm:$0xff]   ;;  %v3732_v5 = vld [vmem:[%s3984_s14 + $0x18] sm:$0xff]  }
 0x777   : > { %v2751_v36 = vcombine.low %v2732_v28, %v2748_v29  ;;  %v2750_v32 = vcombine.high %v2725_v50, %v2741_v30  ;;  %v2749_v17 = vcombine.low %v2725_v50, %v2741_v30  ;;  %v2752_v35 = vcombine.high %v2732_v28, %v2748_v29 }
 0x778   : > { %v2864_v30 = vsub.s32 1, %v4047_v31 }
 0x779   : > { %v3712_v33 = vpack.i.bf16 %v2751_v36, %v1728_v54  ;;  %v3707_v34 = vpack.i.bf16 %v2750_v32, %v1727_v56  ;;  %v3717_v43 = vpack.i.bf16 %v2752_v35, %v1729_v58 }
 0x77b   : > { %3713 = vrot.lane.b32.xlu1 %v3712_v33, %s3858_s18  ;;  %3708 = vrot.lane.b32.xlu0 %v3707_v34, %s3859_s22  ;;  %v2870_v33 = vsub.s32 2, %v4047_v31 }
 0x77f   : > { %3718 = vrot.lane.b32.xlu0 %v3717_v43, %s3860_s25 }
 0x7ed   : > { %v3714_v37 = vpop.permute.xlu1 %3713  ;;  %v3709_v16 = vpop.permute.xlu0 %3708 }
 0x7ee   : > { %v3711_v38 = vunpack.i.h.bf16 %v3709_v16  ;;  %v3710_v54 = vunpack.i.l.bf16 %v3709_v16  ;;  %v3716_v39 = vunpack.i.h.bf16 %v3714_v37  ;;  %v3715_v40 = vunpack.i.l.bf16 %v3714_v37 }
 0x7ef   : > { %v2871_v37 = vrot.slane %v4409_v51, %v2870_v33 }
 0x7f0   : > { %v1742_v56 = vsel %vm1176_vm5, %v1726_v55, %v3710_v54  ;;  %v2765_v41 = vsel %vm1176_vm5, %v2749_v17, %v3711_v38  ;;  %v2776_v55 = vrot.slane %v4409_v51, %v2775_v49  ;;  %v2865_v17 = vrot.slane %v4409_v51, %v2864_v30 }
 0x7f1   : > { %v3719_v47 = vpop.permute.xlu0 %3718  ;;  %v1744_v42 = vsel %vm1743_vm8, %v1742_v56, %v3715_v40  ;;  %v2766_v44 = vsel %vm1743_vm8, %v2765_v41, %v3716_v39  ;;  %v3733_v40 = vld [vmem:[%s3984_s14 + $0x10] sm:$0xff]   ;;  %v3734_v56 = vld [vmem:[%s3984_s14 + $0x8] sm:$0xff]   ;;  %v3735_v41 = vld [vmem:[%s3984_s14] sm:$0xff]  }
 0x7f2   : > { %v3721_v48 = vunpack.i.h.bf16 %v3719_v47  ;;  %v3720_v58 = vunpack.i.l.bf16 %v3719_v47  ;;  %v3404_v47 = vld [vmem:[%s534_s28] ss:$0 sm:$0xff] }
 0x7f4   : > { %v1746_v45 = vsel %vm1745_vm9, %v1744_v42, %v3720_v58  ;;  %v2767_v46 = vsel %vm1745_vm9, %v2766_v44, %v3721_v48 }
 0x7f5   : > { %v2768_v11 = vpack.c.bf16 %v2767_v46, %v1746_v45 }
 0x7f7   : > { %3608 = vmatmul.mubr.msk.bf16.vlgmr.msra.gmra.mxu1 %vm677_vm4, %v2768_v11 }
 0x7f8   : > { %3635 = vmatprep.mubr.msk.bf16.mxu1 %vm3843_vm3, %v3842_v14  ;;  %3620 = vmatpush3.bf16.msra.mxu1 %v3728_v26 }
 0x7f9   : > { %3621 = vmatprep.subr.bf16.mxu1 %v3842_v14 }
 0x7fc   : > { %3622 = vmatpush3.bf16.msra.mxu1 %v3729_v22 }
 0x7fd   : > { %3623 = vmatprep.subr.bf16.mxu1 %v3842_v14 }
 0x800   : > { %3624 = vmatpush3.bf16.msra.mxu1 %v3730_v19 }
 0x801   : > { %3625 = vmatprep.subr.bf16.mxu1 %v3842_v14 }
 0x804   : > { %3626 = vmatpush3.bf16.msra.mxu1 %v3731_v23  ;;  %v3084_v23 = vsub.s32 4, %v4047_v31 }
 0x805   : > { %3627 = vmatprep.subr.bf16.mxu1 %v3842_v14 }
 0x808   : > { %3628 = vmatpush3.bf16.msra.mxu1 %v3732_v5  ;;  %v3090_v5 = vsub.s32 5, %v4047_v31 }
 0x809   : > { %3629 = vmatprep.subr.bf16.mxu1 %v3842_v14 }
 0x80c   : > { %3630 = vmatpush3.bf16.msra.mxu1 %v3733_v40 }
 0x80d   : > { %3631 = vmatprep.subr.bf16.mxu1 %v3842_v14 }
 0x810   : > { %3632 = vmatpush3.bf16.msra.mxu1 %v3734_v56 }
 0x811   : > { %3633 = vmatprep.subr.bf16.mxu1 %v3842_v14 }
 0x814   : > { %3634 = vmatpush3.bf16.msra.mxu1 %v3735_v41 }
 0x8b7   : > { %v2826_v52 = vpop.f32.mrf.mxu1 }
 0x8b8   : > { %v2827_v53 = vadd.f32 %v2826_v52, %v2776_v55  ;;  %v2963_v52 = vsub.s32 3, %v4047_v31 }
 0x8b9   : > { %v3609_v57 = vpop.f32.mrf.mxu1 }
 0x8ba   : > { %v2833_v61 = vadd.f32 %v3776_v60, %v2827_v53  ;;  %v2964_v14 = vrot.slane %v4409_v51, %v2963_v52 }
 0x8bb   : > { %v2829_v62 = vpop.f32.mrf.mxu1 }
 0x8bc   : > { %v2830_v8 = vadd.f32 %v2829_v62, %v2776_v55  ;;  %v2835_v63 = vsel %vm677_vm4, %v2833_v61, 0.0 }
 0x8bd   : > { %2836 = vadd.xlane.f32.xlu1 %v2835_v63  ;;  %v3610_v0 = vpop.f32.mrf.mxu1 }
 0x8be   : > { %v2834_v2 = vadd.f32 %v3777_v1, %v2830_v8 }
 0x8c0   : > { %v2838_v3 = vsel %vm677_vm4, %v2834_v2, 0.0 }
 0x8c1   : > { %2839 = vadd.xlane.f32.xlu0 %v2838_v3 }
 0x946   : > { %v2837_v4 = vpop.xlane.xlu1 %2836 }
 0x947   : > { %v2842_v7 = vmul.f32 0.03125, %v2837_v4 }
 0x949   : > { %v2844_v59 = vsub.f32 %v2833_v61, %v2842_v7 }
 0x94a   : > { %v2840_v9 = vpop.xlane.xlu0 %2839 }
 0x94b   : > { %v2843_v10 = vmul.f32 0.03125, %v2840_v9  ;;  %v2846_v12 = vmul.f32 %v2844_v59, %v2844_v59 }
 0x94d   : > { %v2845_v13 = vsub.f32 %v2834_v2, %v2843_v10  ;;  %v2848_v15 = vsel %vm677_vm4, %v2846_v12, 0.0 }
 0x94e   : > { %2849 = vadd.xlane.f32.xlu0 %v2848_v15 }
 0x94f   : > { %v2847_v18 = vmul.f32 %v2845_v13, %v2845_v13 }
 0x951   : > { %v2851_v21 = vsel %vm677_vm4, %v2847_v18, 0.0 }
 0x952   : > { %2852 = vadd.xlane.f32.xlu1 %v2851_v21 }
 0x9d7   : > { %v2850_v6 = vpop.xlane.xlu0 %2849 }
 0x9d8   : > { %v2854_v25 = vmul.f32 0.03125, %v2850_v6  ;;  %v3085_v6 = vrot.slane %v4409_v51, %v3084_v23 }
 0x9da   : > { %v2856_v27 = vadd.f32 1e-05, %v2854_v25 }
 0x9db   : > { %v2853_v28 = vpop.xlane.xlu1 %2852 }
 0x9dc   : > { %3768 = vrsqrt.f32 %v2856_v27  ;;  %v2855_v29 = vmul.f32 0.03125, %v2853_v28  ;;  %v3091_v27 = vrot.slane %v4409_v51, %v3090_v5 }
 0x9de   : > { %v2857_v50 = vadd.f32 1e-05, %v2855_v29 }
 0x9e0   : > { %3770 = vrsqrt.f32 %v2857_v50 }
 0x9e9   : > { %v3769_v36 = vpop.eup %3768 }
 0x9ea   : > { %v2860_v32 = vmul.f32 %v3769_v36, %v2844_v59 }
 0x9ec   : > { %v2866_v43 = vmul.f32 %v2865_v17, %v2860_v32 }
 0x9ed   : > { %v3771_v34 = vpop.eup %3770 }
 0x9ee   : > { %v2861_v35 = vmul.f32 %v3771_v34, %v2845_v13  ;;  %v2872_v38 = vadd.f32 %v2871_v37, %v2866_v43 }
 0x9f0   : > { %v2867_v16 = vmul.f32 %v2865_v17, %v2861_v35 }
 0x9f2   : > { %v2873_v54 = vadd.f32 %v2871_v37, %v2867_v16 }
 0x9f4   : > { %v2874_v39 = vpack.c.bf16 %v2873_v54, %v2872_v38 }
 0x9f6   : > { %3616 = vmatmul.mubr.msk.bf16.vlgmr.msra.gmra.mxu0 %vm677_vm4, %v2874_v39 }
 0xab6   : > { %v2935_v48 = vpop.f32.mrf.mxu0 }
 0xab7   : > { %v2936_v42 = vadd.f32 %v3404_v47, %v2935_v48 }
 0xab8   : > { %v3617_v58 = vpop.f32.mrf.mxu0 }
 0xab9   : > { %v2942_v11 = vmax.f32 %v2936_v42, 0.0 }
 0xaba   : > { %v2938_v44 = vpop.f32.mrf.mxu0 }
 0xabb   : > { %v2939_v45 = vadd.f32 %v3404_v47, %v2938_v44 }
 0xabc   : > { %v3618_v46 = vpop.f32.mrf.mxu0 }
 0xabd   : > { %v2943_v49 = vmax.f32 %v2939_v45, 0.0 }
 0xabf   : > { %v2944_v55 = vpack.c.bf16 %v2943_v49, %v2942_v11 }
 0xac1   : > { %3636 = vmatmul.mubr.bf16.vlgmr.msra.gmra.mxu1 %v2944_v55 }
 0xb81   : > { %v3047_v53 = vpop.f32.mrf.mxu1 }
 0xb82   : > { %v3048_v57 = vadd.f32 %v3047_v53, %v2964_v14 }
 0xb83   : > { %v3637_v60 = vpop.f32.mrf.mxu1 }
 0xb84   : > { %v3054_v61 = vadd.f32 %v3048_v57, %v2872_v38 }
 0xb85   : > { %v3050_v62 = vpop.f32.mrf.mxu1 }
 0xb86   : > { %v3051_v8 = vadd.f32 %v3050_v62, %v2964_v14  ;;  %v3056_v63 = vsel %vm677_vm4, %v3054_v61, 0.0 }
 0xb87   : > { %3057 = vadd.xlane.f32.xlu0 %v3056_v63  ;;  %v3638_v0 = vpop.f32.mrf.mxu1 }
 0xb88   : > { %v3055_v1 = vadd.f32 %v3051_v8, %v2873_v54 }
 0xb8a   : > { %v3059_v2 = vsel %vm677_vm4, %v3055_v1, 0.0 }
 0xb8b   : > { %3060 = vadd.xlane.f32.xlu1 %v3059_v2 }
 0xc10   : > { %v3058_v3 = vpop.xlane.xlu0 %3057 }
 0xc11   : > { %v3062_v4 = vmul.f32 0.03125, %v3058_v3 }
 0xc13   : > { %v3064_v7 = vsub.f32 %v3054_v61, %v3062_v4 }
 0xc14   : > { %v3061_v59 = vpop.xlane.xlu1 %3060 }
 0xc15   : > { %v3063_v9 = vmul.f32 0.03125, %v3061_v59  ;;  %v3066_v10 = vmul.f32 %v3064_v7, %v3064_v7 }
 0xc17   : > { %v3065_v12 = vsub.f32 %v3055_v1, %v3063_v9  ;;  %v3068_v13 = vsel %vm677_vm4, %v3066_v10, 0.0 }
 0xc18   : > { %3069 = vadd.xlane.f32.xlu0 %v3068_v13 }
 0xc19   : > { %v3067_v15 = vmul.f32 %v3065_v12, %v3065_v12 }
 0xc1b   : > { %v3071_v18 = vsel %vm677_vm4, %v3067_v15, 0.0 }
 0xc1c   : > { %3072 = vadd.xlane.f32.xlu1 %v3071_v18 }
 0xca1   : > { %v3070_v21 = vpop.xlane.xlu0 %3069 }
 0xca2   : > { %v3074_v20 = vmul.f32 0.03125, %v3070_v21 }
 0xca4   : > { %v3076_v24 = vadd.f32 1e-05, %v3074_v20 }
 0xca5   : > { %v3073_v26 = vpop.xlane.xlu1 %3072 }
 0xca6   : > { %3772 = vrsqrt.f32 %v3076_v24  ;;  %v3075_v22 = vmul.f32 0.03125, %v3073_v26 }
 0xca8   : > { %v3077_v19 = vadd.f32 1e-05, %v3075_v22 }
 0xcaa   : > { %3774 = vrsqrt.f32 %v3077_v19 }
 0xcb3   : > { %v3773_v25 = vpop.eup %3772 }
 0xcb4   : > { %v3080_v28 = vmul.f32 %v3773_v25, %v3064_v7 }
 0xcb6   : > { %v3086_v29 = vmul.f32 %v3085_v6, %v3080_v28 }
 0xcb7   : > { %v3775_v50 = vpop.eup %3774 }
 0xcb8   : > { %v3092_v30 = vadd.f32 %v3091_v27, %v3086_v29  ;;  %v3081_v36 = vmul.f32 %v3775_v50, %v3065_v12 }
 0xcba   : > { %3094 = vst.msk [vmem:[#allocation2] sm:$0xff] %vm677_vm4, %v3092_v30  ;;  %v3087_v32 = vmul.f32 %v3085_v6, %v3081_v36  ;;  %3099 = sbr.rel (%p3416_p6) target bundleno = 3786 (0xeca), region = 76 }
 0xcbc   : > { %v3093_v17 = vadd.f32 %v3091_v27, %v3087_v32 }
 0xcbe   : > { %3095 = vst.msk [vmem:[#allocation2 + $0x8] sm:$0xff] %vm677_vm4, %v3093_v17 }
 0xcbf   : > { %v3778_v31 = vld [vmem:[%s4504_s10 + $0x8] sm:$0xff]   ;;  %v3861_v33 = vmov 0.0   ;;  %v3779_v51 = vld [vmem:[%s4504_s10] sm:$0xff]   ;;  %vm3862_vm10 = vmmov 0   ;;  %v3100_v34 = vpack.c.bf16 %v3093_v17, %v3092_v30 }
 0xcc0   : > { %3639 = vmatprep.subr.bf16.mxu0 %v3861_v33  ;;  %3643 = vmatprep.mubr.msk.bf16.mxu0 %vm3862_vm10, %v3861_v33  ;;  %v3417_v35 = vld [vmem:[%s4505_s11] ss:$0 sm:$0xff] }
 0xcc1   : > { %3640 = vmatpush3.bf16.msra.mxu0 %v3778_v31 }
 0xcc2   : > { %3641 = vmatprep.subr.bf16.mxu0 %v3861_v33 }
 0xcc5   : > { %3642 = vmatpush3.bf16.msra.mxu0 %v3779_v51 }
 0xcc8   : > { %3644 = vmatmul.mubr.msk.bf16.vlgmr.msra.gmra.mxu0 %vm677_vm4, %v3100_v34 }
 0xd88   : > { %v3161_v43 = vpop.f32.mrf.mxu0 }
 0xd89   : > { %v3162_v37 = vadd.f32 %v3417_v35, %v3161_v43 }
 0xd8a   : > { %v3645_v16 = vpop.f32.mrf.mxu0 }
 0xd8b   : > { %3168 = vmax.xlane.f32.xlu0 %v3162_v37 }
 0xd8c   : > { %v3164_v38 = vpop.f32.mrf.mxu0 }
 0xd8d   : > { %v3165_v54 = vadd.f32 %v3417_v35, %v3164_v38 }
 0xd8e   : > { %v3646_v39 = vpop.f32.mrf.mxu0 }
 0xd8f   : > { %3170 = vmax.xlane.f32.xlu0 %v3165_v54 }
 0xe14   : > { %v3169_v40 = vpop.xlane.xlu0 %3168 }
 0xe15   : > { %v3172_v56 = vsub.f32 %v3162_v37, %v3169_v40 }
 0xe17   : > { %v3174_v41 = vmul.f32 1.442695, %v3172_v56 }
 0xe18   : > { %v3171_v47 = vpop.xlane.xlu0 %3170 }
 0xe19   : > { %3780 = vpow2.f32 %v3174_v41  ;;  %v3173_v48 = vsub.f32 %v3165_v54, %v3171_v47 }
 0xe1b   : > { %v3176_v58 = vmul.f32 1.442695, %v3173_v48 }
 0xe1d   : > { %3782 = vpow2.f32 %v3176_v58 }
 0xe26   : > { %v3781_v42 = vpop.eup %3780 }
 0xe27   : > { %3178 = vadd.xlane.f32.xlu1 %v3781_v42 }
 0xe2a   : > { %v3783_v44 = vpop.eup %3782 }
 0xe2b   : > { %3180 = vadd.xlane.f32.xlu1 %v3783_v44 }
 0xeb0   : > { %v3179_v45 = vpop.xlane.xlu1 %3178 }
 0xeb1   : > { %3784 = vlog2.f32 %v3179_v45 }
 0xeb4   : > { %v3181_v46 = vpop.xlane.xlu1 %3180 }
 0xeb5   : > { %3786 = vlog2.f32 %v3181_v46 }
 0xebe   : > { %v3785_v11 = vpop.eup %3784 }
 0xebf   : > { %v3183_v49 = vmul.f32 0.6931472, %v3785_v11 }
 0xec1   : > { %v3186_v55 = vadd.f32 %v3183_v49, %v3169_v40 }
 0xec2   : > { %v3787_v52 = vpop.eup %3786 }
 0xec3   : > { %v3188_v14 = vsub.f32 %v3162_v37, %v3186_v55  ;;  %v3185_v53 = vmul.f32 0.6931472, %v3787_v52 }
 0xec5   : > { %3190 = vst [vmem:[#allocation3] sm:$0xff] %v3188_v14  ;;  %v3187_v57 = vadd.f32 %v3185_v53, %v3171_v47 }
 0xec7   : > { %v3189_v60 = vsub.f32 %v3165_v54, %v3187_v57 }
 0xec9   : > { %3191 = vst [vmem:[#allocation3 + $0x8] sm:$0xff] %v3189_v60 }
 0xeca PF: > { %s4514_s30 = sadd.s32 4294967295, %s3838_s23   ;;  %s3863_s29 = smov [#allocation3]  }
 0xecb   : > { %p4469_p7 = scmp.eq.s32.totalorder %s4514_s30, 1  ;;  %s3201_s13 = sshll.u32 %s3863_s29, 4  ;;  %s3202_s13 = int_to_ptr.vmem [resolvable:$true] %s3201_s13 }
 0xecc   : > { %s3788_s16 = scalar_lea.vmem %s3202_s13, 256  ;;  %p3795_p11 = scmp.lt.s32.totalorder %s3202_s13, %s3202_s13 }
 0xecd   : > { %p3789_p8 = scmp.ne.s32.totalorder %s3202_s13, %s3788_s16  ;;  %p3796_p12 = scmp.lt.s32.totalorder %s3788_s16, %s3788_s16 }
 0xecf   : > { %p3790_p9 = pnand %p3789_p8, %p4469_p7  ;;  %p3797_p13 = por %p3796_p12, %p3795_p11 }
 0xed1   : > { %p3791_p10 = pneg %p3790_p9 }
 0xed3   : > { %p3798_p0 = pnand %p3797_p13, %p3791_p10 }
 0xed5   : > { %3801 = shalt.err (!%p3798_p0)
}
 0xed6   : > { %s3864_s27 = smov 128   ;;  %s4516_s18 = sld [smem:[#allocation9_spill]] }
 0xedc   : > { %3648 = dma.vmem_to_hbm [thread:$0]  (%p4469_p7), %s3202_s13, 256, %s4516_s18, [#allocation4], %s3864_s27, %s3864_s27, %s3859_s22  }
 0xedd   : > { %3825 = dma.done.wait (%p4469_p7), [#allocation4], 256  }
 0xede   : > { %3827 = vsyncadd (%p4469_p7), [#allocation4], 4294967040 }
 0xedf PF: > { %s23_s23 = sadd.s32 1, %s3838_s23   ;;  %s4517_s21 = sld [smem:[#allocation6_spill]] }
 0xee0   : > { %p20_p1 = scmp.ge.s32.totalorder %s23_s23, 4   ;;  %s4518_s22 = sld [smem:[#allocation7_spill]] }
 0xee2   :  { %22 = sbr.rel (!%p20_p1) target bundleno = 5 (0x5), region = 125 }
 0xee7   :  { %3217 = vsyncpa [#allocation4], 1 }
 0xee8   :  { %3219 = vsyncpa [#allocation4 + $0x1], 1 }

</bundles_post_ra>
